<compile_context>
chip_gen: v7x
topology: tpu7x:2x2x1
jax: 0.10.0
libtpu: 0.0.40
codegen_flags: <defaults>
</compile_context>

<pallas_src>
import functools

import jax
import jax.numpy as jnp
from jax import lax
from jax.experimental import pallas as pl
from jax.experimental.pallas import tpu as pltpu


def _round_up(x, m):
    return ((x + m - 1) // m) * m


def _vq_stage(ze, E, e_sq):
    """One residual-VQ stage.

    ze   : (TN, C) float32 residual
    E    : (K, C)  float32 codebook
    e_sq : (1, K)  float32 precomputed ||E_k||^2 (grid-invariant)

    Returns (zq, nearest) with zq (TN, C) float32, nearest (TN,) int32.
    """
    TN = ze.shape[0]
    K = E.shape[0]
    # MXU cross term: ze @ E^T without an explicit transpose (contract dim 1 vs dim 1).
    cross = lax.dot_general(
        ze, E, (((1,), (1,)), ((), ())), preferred_element_type=jnp.float32
    )  # (TN, K)
    # ||ze||^2 is constant over k, so it does not affect the argmin — omitted.
    dist = e_sq - 2.0 * cross  # (TN, K)
    minval = jnp.min(dist, axis=1, keepdims=True)
    kio = lax.broadcasted_iota(jnp.int32, (TN, K), 1)
    # first index achieving the minimum (torch.argmin tie-break)
    nearest = jnp.min(jnp.where(dist == minval, kio, K), axis=1)  # (TN,) int32
    onehot = (kio == nearest[:, None]).astype(jnp.float32)        # (TN, K)
    zq = jnp.dot(onehot, E, preferred_element_type=jnp.float32)   # (TN, C) gather via MXU
    return zq, nearest


def _rqvae_kernel(x_ref,
                  w1t_ref, b1_ref, w2t_ref, b2_ref,
                  e1_ref, e1sq_ref, e2_ref, e2sq_ref, e3_ref, e3sq_ref,
                  w3t_ref, b3_ref, w4t_ref, b4_ref,
                  out_ref, *, input_dim, c_dim):
    # Cast after the DMA (halves the input read bytes if x arrives in bf16).
    x = x_ref[...].astype(jnp.float32)
    tn = x.shape[0]

    # Static column offsets inside the packed output slab.
    o_xh = 0
    o_ze1 = input_dim
    o_ze2 = o_ze1 + c_dim
    o_ze3 = o_ze2 + c_dim
    o_zq1 = o_ze3 + c_dim
    o_zq2 = o_zq1 + c_dim
    o_zq3 = o_zq2 + c_dim
    o_idx = o_zq3 + c_dim

    # ----- encoder: Linear -> ReLU -> Linear (weights pre-transposed) -----
    h = jnp.dot(x, w1t_ref[...], preferred_element_type=jnp.float32) + b1_ref[...]
    h = jnp.maximum(h, 0.0)
    ze1 = jnp.dot(h, w2t_ref[...], preferred_element_type=jnp.float32) + b2_ref[...]
    out_ref[:, o_ze1:o_ze1 + c_dim] = ze1

    # ----- residual VQ, 3 stages (matmul-form distances); store each piece
    # as soon as it is produced to keep live ranges short -----
    zq1, n1 = _vq_stage(ze1, e1_ref[...], e1sq_ref[...])
    out_ref[:, o_zq1:o_zq1 + c_dim] = zq1
    ze2 = ze1 - zq1
    out_ref[:, o_ze2:o_ze2 + c_dim] = ze2

    zq2, n2 = _vq_stage(ze2, e2_ref[...], e2sq_ref[...])
    out_ref[:, o_zq2:o_zq2 + c_dim] = zq2
    ze3 = ze2 - zq2
    out_ref[:, o_ze3:o_ze3 + c_dim] = ze3

    zq3, n3 = _vq_stage(ze3, e3_ref[...], e3sq_ref[...])
    out_ref[:, o_zq3:o_zq3 + c_dim] = zq3

    # nearest indices: pack into 3 slab lanes as bit patterns (no separate output
    # stream); the wrapper bitcasts them back to int32.
    cols = lax.broadcasted_iota(jnp.int32, (tn, 3), 1)
    idx_i32 = jnp.where(cols == 0, n1[:, None],
                        jnp.where(cols == 1, n2[:, None], n3[:, None]))
    out_ref[:, o_idx:o_idx + 3] = pltpu.bitcast(idx_i32, jnp.float32)

    # straight-through forward value, exactly as the torch expression evaluates it
    decoder_input = ze1 + (zq1 + zq2 + zq3 - ze1)

    # ----- decoder: Linear -> Sigmoid -> Linear -----
    d = jnp.dot(decoder_input, w3t_ref[...], preferred_element_type=jnp.float32) + b3_ref[...]
    d = jax.nn.sigmoid(d)
    x_hat = jnp.dot(d, w4t_ref[...], preferred_element_type=jnp.float32) + b4_ref[...]
    out_ref[:, o_xh:o_xh + input_dim] = x_hat


def rqvae_forward(x, params, *, row_tile=512):
    """Full RQVAE forward, row-tiled over N with resident weights/codebooks."""
    N, input_dim = x.shape
    C = params["w2"].shape[0]
    slab_w = input_dim + 6 * C + 3   # [x_hat | ze1..ze3 | zq1..zq3 | idx bits]

    # Row tile: multiple of 8, no bigger than needed.  For large N (v7x), keep
    # grid >= 2 so the "parallel" axis actually feeds both TensorCores.
    tn = min(_round_up(row_tile, 8), _round_up(N, 8))
    grid = pl.cdiv(N, tn)            # ragged last block handled by Pallas

    f32 = jnp.float32
    # Pre-transpose Linear weights once (avoids per-tile XLU transposes) and
    # precompute grid-invariant codebook squared norms.
    w1t = params["w1"].astype(f32).T
    w2t = params["w2"].astype(f32).T
    w3t = params["w3"].astype(f32).T
    w4t = params["w4"].astype(f32).T
    b1 = params["b1"].astype(f32).reshape(1, -1)
    b2 = params["b2"].astype(f32).reshape(1, -1)
    b3 = params["b3"].astype(f32).reshape(1, -1)
    b4 = params["b4"].astype(f32).reshape(1, -1)
    e1 = params["e1"].astype(f32)
    e2 = params["e2"].astype(f32)
    e3 = params["e3"].astype(f32)
    e1sq = jnp.sum(e1 * e1, axis=1).reshape(1, -1)
    e2sq = jnp.sum(e2 * e2, axis=1).reshape(1, -1)
    e3sq = jnp.sum(e3 * e3, axis=1).reshape(1, -1)

    consts = (w1t, b1, w2t, b2, e1, e1sq, e2, e2sq, e3, e3sq, w3t, b3, w4t, b4)

    # VMEM budget derived from actual sizes: single-buffered constants +
    # double-buffered x tile and output slab tile, 2x headroom for layout
    # padding / temporaries, clamped so it stays safe on v7x (64 MiB per TC).
    const_bytes = sum(int(a.size) * 4 for a in consts)
    stream_bytes = 2 * tn * input_dim * int(x.dtype.itemsize) + 2 * tn * slab_w * 4
    vmem_limit = int(min(max(2 * (const_bytes + stream_bytes), 32 * 2 ** 20),
                         48 * 2 ** 20))

    kernel = functools.partial(_rqvae_kernel, input_dim=input_dim, c_dim=C)
    out_shape = jax.ShapeDtypeStruct((N, slab_w), jnp.float32)
    row_in_spec = pl.BlockSpec((tn, input_dim), lambda i: (i, 0))
    row_out_spec = pl.BlockSpec((tn, slab_w), lambda i: (i, 0))

    def run(single_buffer_consts):
        def const_spec(a):
            if single_buffer_consts:
                # Same block index every step -> a second buffer is pure VMEM waste.
                return pl.BlockSpec(a.shape, lambda i: (0, 0),
                                    pipeline_mode=pl.Buffered(1))
            return pl.BlockSpec(a.shape, lambda i: (0, 0))

        return pl.pallas_call(
            kernel,
            grid=(grid,),
            in_specs=[row_in_spec] + [const_spec(a) for a in consts],
            out_specs=row_out_spec,
            out_shape=out_shape,
            compiler_params=pltpu.CompilerParams(
                dimension_semantics=("parallel",),   # shard rows over 2 TCs on v7x
                vmem_limit_bytes=vmem_limit,
            ),
        )(x, *consts)

    try:
        slab = run(single_buffer_consts=True)
    except Exception:
        # Fallback for JAX versions that reject single-buffered BlockSpecs;
        # identical semantics, just double-buffered constants.
        slab = run(single_buffer_consts=False)

    x_hat = slab[:, :input_dim]
    off = input_dim
    ze1 = slab[:, off + 0 * C:off + 1 * C]
    ze2 = slab[:, off + 1 * C:off + 2 * C]
    ze3 = slab[:, off + 2 * C:off + 3 * C]
    zq1 = slab[:, off + 3 * C:off + 4 * C]
    zq2 = slab[:, off + 4 * C:off + 5 * C]
    zq3 = slab[:, off + 5 * C:off + 6 * C]
    idx = lax.bitcast_convert_type(slab[:, off + 6 * C:off + 6 * C + 3], jnp.int32)
    n1, n2, n3 = idx[:, 0], idx[:, 1], idx[:, 2]
    return (x_hat, ze1, ze2, ze3, zq1, zq2, zq3, n1, n2, n3)


def _rqvae_reference(x, params):
    """Pure-JAX reference mirroring the torch forward (exact broadcast distances)."""
    h = jnp.maximum(x @ params["w1"].T + params["b1"], 0.0)
    ze1 = h @ params["w2"].T + params["b2"]

    def stage(ze, E):
        dist = jnp.sum((E[None, :, :] - ze[:, None, :]) ** 2, axis=2)
        nearest = jnp.argmin(dist, axis=1).astype(jnp.int32)
        return E[nearest], nearest

    zq1, n1 = stage(ze1, params["e1"])
    ze2 = ze1 - zq1
    zq2, n2 = stage(ze2, params["e2"])
    ze3 = ze2 - zq2
    zq3, n3 = stage(ze3, params["e3"])
    dec_in = ze1 + (zq1 + zq2 + zq3 - ze1)
    d = jax.nn.sigmoid(dec_in @ params["w3"].T + params["b3"])
    x_hat = d @ params["w4"].T + params["b4"]
    return (x_hat, ze1, ze2, ze3, zq1, zq2, zq3, n1, n2, n3)


def init_params(key, input_dim, hidden_dim, output_dim, k1, k2, k3):
    """Deterministic parameter init mirroring the module's shapes (synthetic)."""
    ks = jax.random.split(key, 12)

    def lin(kw, kb, out_f, in_f):
        bound = 1.0 / jnp.sqrt(in_f)
        w = jax.random.uniform(kw, (out_f, in_f), jnp.float32, -bound, bound)
        b = jax.random.uniform(kb, (out_f,), jnp.float32, -bound, bound)
        return w, b

    w1, b1 = lin(ks[0], ks[1], hidden_dim, input_dim)
    w2, b2 = lin(ks[2], ks[3], output_dim, hidden_dim)
    w3, b3 = lin(ks[4], ks[5], hidden_dim, output_dim)
    w4, b4 = lin(ks[6], ks[7], input_dim, hidden_dim)
    e1 = jax.random.uniform(ks[8], (k1, output_dim), jnp.float32, -1.0 / k1, 1.0 / k1)
    e2 = jax.random.uniform(ks[9], (k2, output_dim), jnp.float32, -1.0 / k2, 1.0 / k2)
    e3 = jax.random.uniform(ks[10], (k3, output_dim), jnp.float32, -1.0 / k3, 1.0 / k3)
    return dict(w1=w1, b1=b1, w2=w2, b2=b2, w3=w3, b3=b3, w4=w4, b4=b4,
                e1=e1, e2=e2, e3=e3)


if __name__ == "__main__":
    N, INPUT_DIM, HIDDEN_DIM, OUTPUT_DIM = 8, 32, 32, 16
    K1, K2, K3 = 32, 32, 32

    key = jax.random.PRNGKey(0)
    kx, kp = jax.random.split(key)
    x = jax.random.normal(kx, (N, INPUT_DIM), jnp.float32)
    params = init_params(kp, INPUT_DIM, HIDDEN_DIM, OUTPUT_DIM, K1, K2, K3)

    outs = rqvae_forward(x, params)
    outs = jax.block_until_ready(outs)

    # shape checks
    assert outs[0].shape == (N, INPUT_DIM)
    assert all(o.shape == (N, OUTPUT_DIM) for o in outs[1:7])
    assert all(o.shape == (N,) for o in outs[7:10])

    # numeric check against a pure-JAX reference of the torch forward
    refs = _rqvae_reference(x, params)
    import numpy as np
    for got, ref in zip(outs[:7], refs[:7]):
        np.testing.assert_allclose(np.asarray(got), np.asarray(ref), rtol=1e-4, atol=1e-4)
    for got, ref in zip(outs[7:10], refs[7:10]):
        np.testing.assert_array_equal(np.asarray(got), np.asarray(ref))

    print("KERNEL_OK")
</pallas_src>

<mosaic_0001>
module attributes {stable_mosaic.version = 11 : i64} {
  func.func @_rqvae_kernel(%arg0: i32, %arg1: memref<8x32xf32, #tpu.memory_space<vmem>>, %arg2: memref<32x32xf32, #tpu.memory_space<vmem>>, %arg3: memref<1x32xf32, #tpu.memory_space<vmem>>, %arg4: memref<32x16xf32, #tpu.memory_space<vmem>>, %arg5: memref<1x16xf32, #tpu.memory_space<vmem>>, %arg6: memref<32x16xf32, #tpu.memory_space<vmem>>, %arg7: memref<1x32xf32, #tpu.memory_space<vmem>>, %arg8: memref<32x16xf32, #tpu.memory_space<vmem>>, %arg9: memref<1x32xf32, #tpu.memory_space<vmem>>, %arg10: memref<32x16xf32, #tpu.memory_space<vmem>>, %arg11: memref<1x32xf32, #tpu.memory_space<vmem>>, %arg12: memref<16x32xf32, #tpu.memory_space<vmem>>, %arg13: memref<1x32xf32, #tpu.memory_space<vmem>>, %arg14: memref<32x32xf32, #tpu.memory_space<vmem>>, %arg15: memref<1x32xf32, #tpu.memory_space<vmem>>, %arg16: memref<8x131xf32, #tpu.memory_space<vmem>>) attributes {dimension_semantics = [#tpu.dimension_semantics<parallel>], iteration_bounds = array<i64: 1>, scalar_prefetch = 0 : i64, scratch_operands = 0 : i64, tpu.core_type = #tpu.core_type<tc>, window_params = [{transform_indices = @transform_0, window_bounds = array<i64: 8, 32>}, {pipeline_mode = #tpu.pipeline_mode<synchronous>, transform_indices = @transform_1, window_bounds = array<i64: 32, 32>}, {pipeline_mode = #tpu.pipeline_mode<synchronous>, transform_indices = @transform_2, window_bounds = array<i64: 1, 32>}, {pipeline_mode = #tpu.pipeline_mode<synchronous>, transform_indices = @transform_3, window_bounds = array<i64: 32, 16>}, {pipeline_mode = #tpu.pipeline_mode<synchronous>, transform_indices = @transform_4, window_bounds = array<i64: 1, 16>}, {pipeline_mode = #tpu.pipeline_mode<synchronous>, transform_indices = @transform_5, window_bounds = array<i64: 32, 16>}, {pipeline_mode = #tpu.pipeline_mode<synchronous>, transform_indices = @transform_6, window_bounds = array<i64: 1, 32>}, {pipeline_mode = #tpu.pipeline_mode<synchronous>, transform_indices = @transform_7, window_bounds = array<i64: 32, 16>}, {pipeline_mode = #tpu.pipeline_mode<synchronous>, transform_indices = @transform_8, window_bounds = array<i64: 1, 32>}, {pipeline_mode = #tpu.pipeline_mode<synchronous>, transform_indices = @transform_9, window_bounds = array<i64: 32, 16>}, {pipeline_mode = #tpu.pipeline_mode<synchronous>, transform_indices = @transform_10, window_bounds = array<i64: 1, 32>}, {pipeline_mode = #tpu.pipeline_mode<synchronous>, transform_indices = @transform_11, window_bounds = array<i64: 16, 32>}, {pipeline_mode = #tpu.pipeline_mode<synchronous>, transform_indices = @transform_12, window_bounds = array<i64: 1, 32>}, {pipeline_mode = #tpu.pipeline_mode<synchronous>, transform_indices = @transform_13, window_bounds = array<i64: 32, 32>}, {pipeline_mode = #tpu.pipeline_mode<synchronous>, transform_indices = @transform_14, window_bounds = array<i64: 1, 32>}, {transform_indices = @transform_15, window_bounds = array<i64: 8, 131>}]} {
    %c0 = arith.constant 0 : index
    %c0_0 = arith.constant 0 : index
    %0 = vector.load %arg1[%c0, %c0_0] : memref<8x32xf32, #tpu.memory_space<vmem>>, vector<8x32xf32>
    %c0_1 = arith.constant 0 : index
    %c0_2 = arith.constant 0 : index
    %1 = vector.load %arg2[%c0_1, %c0_2] : memref<32x32xf32, #tpu.memory_space<vmem>>, vector<32x32xf32>
    %cst = arith.constant dense<0.000000e+00> : vector<8x32xf32>
    %2 = tpu.matmul %0, %1, %cst {dimension_numbers = #tpu.dot_dimension_numbers<[1], [0], [0], [1], [0, 0, 1, 1], [], []>} : vector<8x32xf32>, vector<32x32xf32>, vector<8x32xf32> -> vector<8x32xf32>
    %c0_3 = arith.constant 0 : index
    %c0_4 = arith.constant 0 : index
    %3 = vector.load %arg3[%c0_3, %c0_4] : memref<1x32xf32, #tpu.memory_space<vmem>>, vector<1x32xf32>
    %4 = vector.broadcast %3 : vector<1x32xf32> to vector<8x32xf32>
    %5 = arith.addf %2, %4 : vector<8x32xf32>
    %cst_5 = arith.constant 0.000000e+00 : f32
    %6 = vector.broadcast %cst_5 : f32 to vector<8x32xf32>
    %7 = arith.maximumf %5, %6 : vector<8x32xf32>
    %c0_6 = arith.constant 0 : index
    %c0_7 = arith.constant 0 : index
    %8 = vector.load %arg4[%c0_6, %c0_7] : memref<32x16xf32, #tpu.memory_space<vmem>>, vector<32x16xf32>
    %cst_8 = arith.constant dense<0.000000e+00> : vector<8x16xf32>
    %9 = tpu.matmul %7, %8, %cst_8 {dimension_numbers = #tpu.dot_dimension_numbers<[1], [0], [0], [1], [0, 0, 1, 1], [], []>} : vector<8x32xf32>, vector<32x16xf32>, vector<8x16xf32> -> vector<8x16xf32>
    %c0_9 = arith.constant 0 : index
    %c0_10 = arith.constant 0 : index
    %10 = vector.load %arg5[%c0_9, %c0_10] : memref<1x16xf32, #tpu.memory_space<vmem>>, vector<1x16xf32>
    %11 = vector.broadcast %10 : vector<1x16xf32> to vector<8x16xf32>
    %12 = arith.addf %9, %11 : vector<8x16xf32>
    %c0_11 = arith.constant 0 : index
    %c32 = arith.constant 32 : index
    %13 = vector.load %arg16[%c0_11, %c32] : memref<8x131xf32, #tpu.memory_space<vmem>>, vector<8x16xf32>
    tpu.vector_store %arg16[%c0_11, %c32], %12 {strides = array<i32>} : memref<8x131xf32, #tpu.memory_space<vmem>>, vector<8x16xf32>,
    %c0_12 = arith.constant 0 : index
    %c0_13 = arith.constant 0 : index
    %14 = vector.load %arg6[%c0_12, %c0_13] : memref<32x16xf32, #tpu.memory_space<vmem>>, vector<32x16xf32>
    %c0_14 = arith.constant 0 : index
    %c0_15 = arith.constant 0 : index
    %15 = vector.load %arg7[%c0_14, %c0_15] : memref<1x32xf32, #tpu.memory_space<vmem>>, vector<1x32xf32>
    %cst_16 = arith.constant dense<0.000000e+00> : vector<8x32xf32>
    %16 = tpu.matmul %12, %14, %cst_16 {dimension_numbers = #tpu.dot_dimension_numbers<[1], [1], [0], [0], [0, 0, 1, 0], [], []>} : vector<8x16xf32>, vector<32x16xf32>, vector<8x32xf32> -> vector<8x32xf32>
    %cst_17 = arith.constant 2.000000e+00 : f32
    %17 = vector.broadcast %cst_17 : f32 to vector<8x32xf32>
    %18 = arith.mulf %17, %16 : vector<8x32xf32>
    %19 = vector.broadcast %15 : vector<1x32xf32> to vector<8x32xf32>
    %20 = arith.subf %19, %18 : vector<8x32xf32>
    %cst_18 = arith.constant dense<0x7F800000> : vector<8xf32>
    %21 = vector.multi_reduction <minimumf>, %20, %cst_18 [1] : vector<8x32xf32> to vector<8xf32>
    %22 = vector.shape_cast %21 : vector<8xf32> to vector<8x1xf32>
    %23 = tpu.iota {dimensions = array<i32: 1>} : vector<8x32xi32>
    %24 = vector.broadcast %22 : vector<8x1xf32> to vector<8x32xf32>
    %25 = arith.cmpf oeq, %20, %24 : vector<8x32xf32>
    %c32_i32 = arith.constant 32 : i32
    %26 = vector.broadcast %c32_i32 : i32 to vector<8x32xi32>
    %27 = arith.select %25, %23, %26 : vector<8x32xi1>, vector<8x32xi32>
    %cst_19 = arith.constant dense<2147483647> : vector<8xi32>
    %28 = vector.multi_reduction <minsi>, %27, %cst_19 [1] : vector<8x32xi32> to vector<8xi32>
    %29 = vector.shape_cast %28 : vector<8xi32> to vector<8x1xi32>
    %30 = vector.broadcast %29 : vector<8x1xi32> to vector<8x32xi32>
    %31 = arith.cmpi eq, %23, %30 : vector<8x32xi32>
    %32 = arith.extui %31 : vector<8x32xi1> to vector<8x32xi32>
    %33 = arith.sitofp %32 : vector<8x32xi32> to vector<8x32xf32>
    %cst_20 = arith.constant dense<0.000000e+00> : vector<8x16xf32>
    %34 = tpu.matmul %33, %14, %cst_20 {dimension_numbers = #tpu.dot_dimension_numbers<[1], [0], [0], [1], [0, 0, 1, 1], [], []>} : vector<8x32xf32>, vector<32x16xf32>, vector<8x16xf32> -> vector<8x16xf32>
    %c0_21 = arith.constant 0 : index
    %c80 = arith.constant 80 : index
    %35 = vector.load %arg16[%c0_21, %c80] : memref<8x131xf32, #tpu.memory_space<vmem>>, vector<8x16xf32>
    tpu.vector_store %arg16[%c0_21, %c80], %34 {strides = array<i32>} : memref<8x131xf32, #tpu.memory_space<vmem>>, vector<8x16xf32>,
    %36 = arith.subf %12, %34 : vector<8x16xf32>
    %c0_22 = arith.constant 0 : index
    %c48 = arith.constant 48 : index
    %37 = vector.load %arg16[%c0_22, %c48] : memref<8x131xf32, #tpu.memory_space<vmem>>, vector<8x16xf32>
    tpu.vector_store %arg16[%c0_22, %c48], %36 {strides = array<i32>} : memref<8x131xf32, #tpu.memory_space<vmem>>, vector<8x16xf32>,
    %c0_23 = arith.constant 0 : index
    %c0_24 = arith.constant 0 : index
    %38 = vector.load %arg8[%c0_23, %c0_24] : memref<32x16xf32, #tpu.memory_space<vmem>>, vector<32x16xf32>
    %c0_25 = arith.constant 0 : index
    %c0_26 = arith.constant 0 : index
    %39 = vector.load %arg9[%c0_25, %c0_26] : memref<1x32xf32, #tpu.memory_space<vmem>>, vector<1x32xf32>
    %cst_27 = arith.constant dense<0.000000e+00> : vector<8x32xf32>
    %40 = tpu.matmul %36, %38, %cst_27 {dimension_numbers = #tpu.dot_dimension_numbers<[1], [1], [0], [0], [0, 0, 1, 0], [], []>} : vector<8x16xf32>, vector<32x16xf32>, vector<8x32xf32> -> vector<8x32xf32>
    %cst_28 = arith.constant 2.000000e+00 : f32
    %41 = vector.broadcast %cst_28 : f32 to vector<8x32xf32>
    %42 = arith.mulf %41, %40 : vector<8x32xf32>
    %43 = vector.broadcast %39 : vector<1x32xf32> to vector<8x32xf32>
    %44 = arith.subf %43, %42 : vector<8x32xf32>
    %cst_29 = arith.constant dense<0x7F800000> : vector<8xf32>
    %45 = vector.multi_reduction <minimumf>, %44, %cst_29 [1] : vector<8x32xf32> to vector<8xf32>
    %46 = vector.shape_cast %45 : vector<8xf32> to vector<8x1xf32>
    %47 = tpu.iota {dimensions = array<i32: 1>} : vector<8x32xi32>
    %48 = vector.broadcast %46 : vector<8x1xf32> to vector<8x32xf32>
    %49 = arith.cmpf oeq, %44, %48 : vector<8x32xf32>
    %c32_i32_30 = arith.constant 32 : i32
    %50 = vector.broadcast %c32_i32_30 : i32 to vector<8x32xi32>
    %51 = arith.select %49, %47, %50 : vector<8x32xi1>, vector<8x32xi32>
    %cst_31 = arith.constant dense<2147483647> : vector<8xi32>
    %52 = vector.multi_reduction <minsi>, %51, %cst_31 [1] : vector<8x32xi32> to vector<8xi32>
    %53 = vector.shape_cast %52 : vector<8xi32> to vector<8x1xi32>
    %54 = vector.broadcast %53 : vector<8x1xi32> to vector<8x32xi32>
    %55 = arith.cmpi eq, %47, %54 : vector<8x32xi32>
    %56 = arith.extui %55 : vector<8x32xi1> to vector<8x32xi32>
    %57 = arith.sitofp %56 : vector<8x32xi32> to vector<8x32xf32>
    %cst_32 = arith.constant dense<0.000000e+00> : vector<8x16xf32>
    %58 = tpu.matmul %57, %38, %cst_32 {dimension_numbers = #tpu.dot_dimension_numbers<[1], [0], [0], [1], [0, 0, 1, 1], [], []>} : vector<8x32xf32>, vector<32x16xf32>, vector<8x16xf32> -> vector<8x16xf32>
    %c0_33 = arith.constant 0 : index
    %c96 = arith.constant 96 : index
    %59 = vector.load %arg16[%c0_33, %c96] : memref<8x131xf32, #tpu.memory_space<vmem>>, vector<8x16xf32>
    tpu.vector_store %arg16[%c0_33, %c96], %58 {strides = array<i32>} : memref<8x131xf32, #tpu.memory_space<vmem>>, vector<8x16xf32>,
    %60 = arith.subf %36, %58 : vector<8x16xf32>
    %c0_34 = arith.constant 0 : index
    %c64 = arith.constant 64 : index
    %61 = vector.load %arg16[%c0_34, %c64] : memref<8x131xf32, #tpu.memory_space<vmem>>, vector<8x16xf32>
    tpu.vector_store %arg16[%c0_34, %c64], %60 {strides = array<i32>} : memref<8x131xf32, #tpu.memory_space<vmem>>, vector<8x16xf32>,
    %c0_35 = arith.constant 0 : index
    %c0_36 = arith.constant 0 : index
    %62 = vector.load %arg10[%c0_35, %c0_36] : memref<32x16xf32, #tpu.memory_space<vmem>>, vector<32x16xf32>
    %c0_37 = arith.constant 0 : index
    %c0_38 = arith.constant 0 : index
    %63 = vector.load %arg11[%c0_37, %c0_38] : memref<1x32xf32, #tpu.memory_space<vmem>>, vector<1x32xf32>
    %cst_39 = arith.constant dense<0.000000e+00> : vector<8x32xf32>
    %64 = tpu.matmul %60, %62, %cst_39 {dimension_numbers = #tpu.dot_dimension_numbers<[1], [1], [0], [0], [0, 0, 1, 0], [], []>} : vector<8x16xf32>, vector<32x16xf32>, vector<8x32xf32> -> vector<8x32xf32>
    %cst_40 = arith.constant 2.000000e+00 : f32
    %65 = vector.broadcast %cst_40 : f32 to vector<8x32xf32>
    %66 = arith.mulf %65, %64 : vector<8x32xf32>
    %67 = vector.broadcast %63 : vector<1x32xf32> to vector<8x32xf32>
    %68 = arith.subf %67, %66 : vector<8x32xf32>
    %cst_41 = arith.constant dense<0x7F800000> : vector<8xf32>
    %69 = vector.multi_reduction <minimumf>, %68, %cst_41 [1] : vector<8x32xf32> to vector<8xf32>
    %70 = vector.shape_cast %69 : vector<8xf32> to vector<8x1xf32>
    %71 = tpu.iota {dimensions = array<i32: 1>} : vector<8x32xi32>
    %72 = vector.broadcast %70 : vector<8x1xf32> to vector<8x32xf32>
    %73 = arith.cmpf oeq, %68, %72 : vector<8x32xf32>
    %c32_i32_42 = arith.constant 32 : i32
    %74 = vector.broadcast %c32_i32_42 : i32 to vector<8x32xi32>
    %75 = arith.select %73, %71, %74 : vector<8x32xi1>, vector<8x32xi32>
    %cst_43 = arith.constant dense<2147483647> : vector<8xi32>
    %76 = vector.multi_reduction <minsi>, %75, %cst_43 [1] : vector<8x32xi32> to vector<8xi32>
    %77 = vector.shape_cast %76 : vector<8xi32> to vector<8x1xi32>
    %78 = vector.broadcast %77 : vector<8x1xi32> to vector<8x32xi32>
    %79 = arith.cmpi eq, %71, %78 : vector<8x32xi32>
    %80 = arith.extui %79 : vector<8x32xi1> to vector<8x32xi32>
    %81 = arith.sitofp %80 : vector<8x32xi32> to vector<8x32xf32>
    %cst_44 = arith.constant dense<0.000000e+00> : vector<8x16xf32>
    %82 = tpu.matmul %81, %62, %cst_44 {dimension_numbers = #tpu.dot_dimension_numbers<[1], [0], [0], [1], [0, 0, 1, 1], [], []>} : vector<8x32xf32>, vector<32x16xf32>, vector<8x16xf32> -> vector<8x16xf32>
    %c0_45 = arith.constant 0 : index
    %c112 = arith.constant 112 : index
    %83 = vector.load %arg16[%c0_45, %c112] : memref<8x131xf32, #tpu.memory_space<vmem>>, vector<8x16xf32>
    tpu.vector_store %arg16[%c0_45, %c112], %82 {strides = array<i32>} : memref<8x131xf32, #tpu.memory_space<vmem>>, vector<8x16xf32>,
    %84 = tpu.iota {dimensions = array<i32: 1>} : vector<8x3xi32>
    %c0_i32 = arith.constant 0 : i32
    %85 = vector.broadcast %c0_i32 : i32 to vector<8x3xi32>
    %86 = arith.cmpi eq, %84, %85 : vector<8x3xi32>
    %87 = vector.shape_cast %28 : vector<8xi32> to vector<8x1xi32>
    %c1_i32 = arith.constant 1 : i32
    %88 = vector.broadcast %c1_i32 : i32 to vector<8x3xi32>
    %89 = arith.cmpi eq, %84, %88 : vector<8x3xi32>
    %90 = vector.shape_cast %52 : vector<8xi32> to vector<8x1xi32>
    %91 = vector.shape_cast %76 : vector<8xi32> to vector<8x1xi32>
    %92 = vector.shape_cast %90 : vector<8x1xi32> to vector<8x1xi32>
    %93 = vector.broadcast %92 : vector<8x1xi32> to vector<8x3xi32>
    %94 = vector.shape_cast %91 : vector<8x1xi32> to vector<8x1xi32>
    %95 = vector.broadcast %94 : vector<8x1xi32> to vector<8x3xi32>
    %96 = arith.select %89, %93, %95 : vector<8x3xi1>, vector<8x3xi32>
    %97 = vector.shape_cast %87 : vector<8x1xi32> to vector<8x1xi32>
    %98 = vector.broadcast %97 : vector<8x1xi32> to vector<8x3xi32>
    %99 = arith.select %86, %98, %96 : vector<8x3xi1>, vector<8x3xi32>
    %100 = tpu.bitcast %99 : vector<8x3xi32> -> vector<8x3xf32>
    %c0_46 = arith.constant 0 : index
    %c128 = arith.constant 128 : index
    %101 = vector.load %arg16[%c0_46, %c128] : memref<8x131xf32, #tpu.memory_space<vmem>>, vector<8x3xf32>
    tpu.vector_store %arg16[%c0_46, %c128], %100 {strides = array<i32>} : memref<8x131xf32, #tpu.memory_space<vmem>>, vector<8x3xf32>,
    %102 = arith.addf %34, %58 : vector<8x16xf32>
    %103 = arith.addf %102, %82 : vector<8x16xf32>
    %104 = arith.subf %103, %12 : vector<8x16xf32>
    %105 = arith.addf %12, %104 : vector<8x16xf32>
    %c0_47 = arith.constant 0 : index
    %c0_48 = arith.constant 0 : index
    %106 = vector.load %arg12[%c0_47, %c0_48] : memref<16x32xf32, #tpu.memory_space<vmem>>, vector<16x32xf32>
    %cst_49 = arith.constant dense<0.000000e+00> : vector<8x32xf32>
    %107 = tpu.matmul %105, %106, %cst_49 {dimension_numbers = #tpu.dot_dimension_numbers<[1], [0], [0], [1], [0, 0, 1, 1], [], []>} : vector<8x16xf32>, vector<16x32xf32>, vector<8x32xf32> -> vector<8x32xf32>
    %c0_50 = arith.constant 0 : index
    %c0_51 = arith.constant 0 : index
    %108 = vector.load %arg13[%c0_50, %c0_51] : memref<1x32xf32, #tpu.memory_space<vmem>>, vector<1x32xf32>
    %109 = vector.broadcast %108 : vector<1x32xf32> to vector<8x32xf32>
    %110 = arith.addf %107, %109 : vector<8x32xf32>
    %111 = arith.negf %110 : vector<8x32xf32>
    %112 = math.exp %111 : vector<8x32xf32>
    %cst_52 = arith.constant 1.000000e+00 : f32
    %113 = vector.broadcast %cst_52 : f32 to vector<8x32xf32>
    %114 = arith.addf %113, %112 : vector<8x32xf32>
    %115 = arith.divf %113, %114 : vector<8x32xf32>
    %c0_53 = arith.constant 0 : index
    %c0_54 = arith.constant 0 : index
    %116 = vector.load %arg14[%c0_53, %c0_54] : memref<32x32xf32, #tpu.memory_space<vmem>>, vector<32x32xf32>
    %cst_55 = arith.constant dense<0.000000e+00> : vector<8x32xf32>
    %117 = tpu.matmul %115, %116, %cst_55 {dimension_numbers = #tpu.dot_dimension_numbers<[1], [0], [0], [1], [0, 0, 1, 1], [], []>} : vector<8x32xf32>, vector<32x32xf32>, vector<8x32xf32> -> vector<8x32xf32>
    %c0_56 = arith.constant 0 : index
    %c0_57 = arith.constant 0 : index
    %118 = vector.load %arg15[%c0_56, %c0_57] : memref<1x32xf32, #tpu.memory_space<vmem>>, vector<1x32xf32>
    %119 = vector.broadcast %118 : vector<1x32xf32> to vector<8x32xf32>
    %120 = arith.addf %117, %119 : vector<8x32xf32>
    %c0_58 = arith.constant 0 : index
    %c0_59 = arith.constant 0 : index
    %121 = vector.load %arg16[%c0_58, %c0_59] : memref<8x131xf32, #tpu.memory_space<vmem>>, vector<8x32xf32>
    tpu.vector_store %arg16[%c0_58, %c0_59], %120 {strides = array<i32>} : memref<8x131xf32, #tpu.memory_space<vmem>>, vector<8x32xf32>,
    return
  }
  func.func @transform_0(%arg0: i32) -> (i32, i32) {
    %c0_i32 = arith.constant 0 : i32
    %c0_i32_0 = arith.constant 0 : i32
    return %arg0, %c0_i32 : i32, i32
  }
  func.func @transform_1(%arg0: i32) -> (i32, i32) {
    %c0_i32 = arith.constant 0 : i32
    %c0_i32_0 = arith.constant 0 : i32
    %c0_i32_1 = arith.constant 0 : i32
    return %c0_i32, %c0_i32_0 : i32, i32
  }
  func.func @transform_2(%arg0: i32) -> (i32, i32) {
    %c0_i32 = arith.constant 0 : i32
    %c0_i32_0 = arith.constant 0 : i32
    %c0_i32_1 = arith.constant 0 : i32
    return %c0_i32, %c0_i32_0 : i32, i32
  }
  func.func @transform_3(%arg0: i32) -> (i32, i32) {
    %c0_i32 = arith.constant 0 : i32
    %c0_i32_0 = arith.constant 0 : i32
    %c0_i32_1 = arith.constant 0 : i32
    return %c0_i32, %c0_i32_0 : i32, i32
  }
  func.func @transform_4(%arg0: i32) -> (i32, i32) {
    %c0_i32 = arith.constant 0 : i32
    %c0_i32_0 = arith.constant 0 : i32
    %c0_i32_1 = arith.constant 0 : i32
    return %c0_i32, %c0_i32_0 : i32, i32
  }
  func.func @transform_5(%arg0: i32) -> (i32, i32) {
    %c0_i32 = arith.constant 0 : i32
    %c0_i32_0 = arith.constant 0 : i32
    %c0_i32_1 = arith.constant 0 : i32
    return %c0_i32, %c0_i32_0 : i32, i32
  }
  func.func @transform_6(%arg0: i32) -> (i32, i32) {
    %c0_i32 = arith.constant 0 : i32
    %c0_i32_0 = arith.constant 0 : i32
    %c0_i32_1 = arith.constant 0 : i32
    return %c0_i32, %c0_i32_0 : i32, i32
  }
  func.func @transform_7(%arg0: i32) -> (i32, i32) {
    %c0_i32 = arith.constant 0 : i32
    %c0_i32_0 = arith.constant 0 : i32
    %c0_i32_1 = arith.constant 0 : i32
    return %c0_i32, %c0_i32_0 : i32, i32
  }
  func.func @transform_8(%arg0: i32) -> (i32, i32) {
    %c0_i32 = arith.constant 0 : i32
    %c0_i32_0 = arith.constant 0 : i32
    %c0_i32_1 = arith.constant 0 : i32
    return %c0_i32, %c0_i32_0 : i32, i32
  }
  func.func @transform_9(%arg0: i32) -> (i32, i32) {
    %c0_i32 = arith.constant 0 : i32
    %c0_i32_0 = arith.constant 0 : i32
    %c0_i32_1 = arith.constant 0 : i32
    return %c0_i32, %c0_i32_0 : i32, i32
  }
  func.func @transform_10(%arg0: i32) -> (i32, i32) {
    %c0_i32 = arith.constant 0 : i32
    %c0_i32_0 = arith.constant 0 : i32
    %c0_i32_1 = arith.constant 0 : i32
    return %c0_i32, %c0_i32_0 : i32, i32
  }
  func.func @transform_11(%arg0: i32) -> (i32, i32) {
    %c0_i32 = arith.constant 0 : i32
    %c0_i32_0 = arith.constant 0 : i32
    %c0_i32_1 = arith.constant 0 : i32
    return %c0_i32, %c0_i32_0 : i32, i32
  }
  func.func @transform_12(%arg0: i32) -> (i32, i32) {
    %c0_i32 = arith.constant 0 : i32
    %c0_i32_0 = arith.constant 0 : i32
    %c0_i32_1 = arith.constant 0 : i32
    return %c0_i32, %c0_i32_0 : i32, i32
  }
  func.func @transform_13(%arg0: i32) -> (i32, i32) {
    %c0_i32 = arith.constant 0 : i32
    %c0_i32_0 = arith.constant 0 : i32
    %c0_i32_1 = arith.constant 0 : i32
    return %c0_i32, %c0_i32_0 : i32, i32
  }
  func.func @transform_14(%arg0: i32) -> (i32, i32) {
    %c0_i32 = arith.constant 0 : i32
    %c0_i32_0 = arith.constant 0 : i32
    %c0_i32_1 = arith.constant 0 : i32
    return %c0_i32, %c0_i32_0 : i32, i32
  }
  func.func @transform_15(%arg0: i32) -> (i32, i32) {
    %c0_i32 = arith.constant 0 : i32
    %c0_i32_0 = arith.constant 0 : i32
    return %arg0, %c0_i32 : i32, i32
  }
}

module attributes {stable_mosaic.version = 11 : i64} {
  func.func @_rqvae_kernel(%arg0: i32, %arg1: memref<8x32xf32, #tpu.memory_space<vmem>>, %arg2: memref<32x32xf32, #tpu.memory_space<vmem>>, %arg3: memref<1x32xf32, #tpu.memory_space<vmem>>, %arg4: memref<32x16xf32, #tpu.memory_space<vmem>>, %arg5: memref<1x16xf32, #tpu.memory_space<vmem>>, %arg6: memref<32x16xf32, #tpu.memory_space<vmem>>, %arg7: memref<1x32xf32, #tpu.memory_space<vmem>>, %arg8: memref<32x16xf32, #tpu.memory_space<vmem>>, %arg9: memref<1x32xf32, #tpu.memory_space<vmem>>, %arg10: memref<32x16xf32, #tpu.memory_space<vmem>>, %arg11: memref<1x32xf32, #tpu.memory_space<vmem>>, %arg12: memref<16x32xf32, #tpu.memory_space<vmem>>, %arg13: memref<1x32xf32, #tpu.memory_space<vmem>>, %arg14: memref<32x32xf32, #tpu.memory_space<vmem>>, %arg15: memref<1x32xf32, #tpu.memory_space<vmem>>, %arg16: memref<8x131xf32, #tpu.memory_space<vmem>>) attributes {dimension_semantics = [#tpu.dimension_semantics<parallel>], iteration_bounds = array<i64: 1>, scalar_prefetch = 0 : i64, scratch_operands = 0 : i64, tpu.core_type = #tpu.core_type<tc>, window_params = [{transform_indices = @transform_0, window_bounds = array<i64: 8, 32>}, {pipeline_mode = #tpu.pipeline_mode<synchronous>, transform_indices = @transform_1, window_bounds = array<i64: 32, 32>}, {pipeline_mode = #tpu.pipeline_mode<synchronous>, transform_indices = @transform_2, window_bounds = array<i64: 1, 32>}, {pipeline_mode = #tpu.pipeline_mode<synchronous>, transform_indices = @transform_3, window_bounds = array<i64: 32, 16>}, {pipeline_mode = #tpu.pipeline_mode<synchronous>, transform_indices = @transform_4, window_bounds = array<i64: 1, 16>}, {pipeline_mode = #tpu.pipeline_mode<synchronous>, transform_indices = @transform_5, window_bounds = array<i64: 32, 16>}, {pipeline_mode = #tpu.pipeline_mode<synchronous>, transform_indices = @transform_6, window_bounds = array<i64: 1, 32>}, {pipeline_mode = #tpu.pipeline_mode<synchronous>, transform_indices = @transform_7, window_bounds = array<i64: 32, 16>}, {pipeline_mode = #tpu.pipeline_mode<synchronous>, transform_indices = @transform_8, window_bounds = array<i64: 1, 32>}, {pipeline_mode = #tpu.pipeline_mode<synchronous>, transform_indices = @transform_9, window_bounds = array<i64: 32, 16>}, {pipeline_mode = #tpu.pipeline_mode<synchronous>, transform_indices = @transform_10, window_bounds = array<i64: 1, 32>}, {pipeline_mode = #tpu.pipeline_mode<synchronous>, transform_indices = @transform_11, window_bounds = array<i64: 16, 32>}, {pipeline_mode = #tpu.pipeline_mode<synchronous>, transform_indices = @transform_12, window_bounds = array<i64: 1, 32>}, {pipeline_mode = #tpu.pipeline_mode<synchronous>, transform_indices = @transform_13, window_bounds = array<i64: 32, 32>}, {pipeline_mode = #tpu.pipeline_mode<synchronous>, transform_indices = @transform_14, window_bounds = array<i64: 1, 32>}, {transform_indices = @transform_15, window_bounds = array<i64: 8, 131>}]} {
    %c0 = arith.constant 0 : index
    %c0_0 = arith.constant 0 : index
    %0 = vector.load %arg1[%c0, %c0_0] : memref<8x32xf32, #tpu.memory_space<vmem>>, vector<8x32xf32>
    %c0_1 = arith.constant 0 : index
    %c0_2 = arith.constant 0 : index
    %1 = vector.load %arg2[%c0_1, %c0_2] : memref<32x32xf32, #tpu.memory_space<vmem>>, vector<32x32xf32>
    %cst = arith.constant dense<0.000000e+00> : vector<8x32xf32>
    %2 = tpu.matmul %0, %1, %cst {dimension_numbers = #tpu.dot_dimension_numbers<[1], [0], [0], [1], [0, 0, 1, 1], [], []>} : vector<8x32xf32>, vector<32x32xf32>, vector<8x32xf32> -> vector<8x32xf32>
    %c0_3 = arith.constant 0 : index
    %c0_4 = arith.constant 0 : index
    %3 = vector.load %arg3[%c0_3, %c0_4] : memref<1x32xf32, #tpu.memory_space<vmem>>, vector<1x32xf32>
    %4 = vector.broadcast %3 : vector<1x32xf32> to vector<8x32xf32>
    %5 = arith.addf %2, %4 : vector<8x32xf32>
    %cst_5 = arith.constant 0.000000e+00 : f32
    %6 = vector.broadcast %cst_5 : f32 to vector<8x32xf32>
    %7 = arith.maximumf %5, %6 : vector<8x32xf32>
    %c0_6 = arith.constant 0 : index
    %c0_7 = arith.constant 0 : index
    %8 = vector.load %arg4[%c0_6, %c0_7] : memref<32x16xf32, #tpu.memory_space<vmem>>, vector<32x16xf32>
    %cst_8 = arith.constant dense<0.000000e+00> : vector<8x16xf32>
    %9 = tpu.matmul %7, %8, %cst_8 {dimension_numbers = #tpu.dot_dimension_numbers<[1], [0], [0], [1], [0, 0, 1, 1], [], []>} : vector<8x32xf32>, vector<32x16xf32>, vector<8x16xf32> -> vector<8x16xf32>
    %c0_9 = arith.constant 0 : index
    %c0_10 = arith.constant 0 : index
    %10 = vector.load %arg5[%c0_9, %c0_10] : memref<1x16xf32, #tpu.memory_space<vmem>>, vector<1x16xf32>
    %11 = vector.broadcast %10 : vector<1x16xf32> to vector<8x16xf32>
    %12 = arith.addf %9, %11 : vector<8x16xf32>
    %c0_11 = arith.constant 0 : index
    %c32 = arith.constant 32 : index
    %13 = vector.load %arg16[%c0_11, %c32] : memref<8x131xf32, #tpu.memory_space<vmem>>, vector<8x16xf32>
    tpu.vector_store %arg16[%c0_11, %c32], %12 {strides = array<i32>} : memref<8x131xf32, #tpu.memory_space<vmem>>, vector<8x16xf32>,
    %c0_12 = arith.constant 0 : index
    %c0_13 = arith.constant 0 : index
    %14 = vector.load %arg6[%c0_12, %c0_13] : memref<32x16xf32, #tpu.memory_space<vmem>>, vector<32x16xf32>
    %c0_14 = arith.constant 0 : index
    %c0_15 = arith.constant 0 : index
    %15 = vector.load %arg7[%c0_14, %c0_15] : memref<1x32xf32, #tpu.memory_space<vmem>>, vector<1x32xf32>
    %cst_16 = arith.constant dense<0.000000e+00> : vector<8x32xf32>
    %16 = tpu.matmul %12, %14, %cst_16 {dimension_numbers = #tpu.dot_dimension_numbers<[1], [1], [0], [0], [0, 0, 1, 0], [], []>} : vector<8x16xf32>, vector<32x16xf32>, vector<8x32xf32> -> vector<8x32xf32>
    %cst_17 = arith.constant 2.000000e+00 : f32
    %17 = vector.broadcast %cst_17 : f32 to vector<8x32xf32>
    %18 = arith.mulf %17, %16 : vector<8x32xf32>
    %19 = vector.broadcast %15 : vector<1x32xf32> to vector<8x32xf32>
    %20 = arith.subf %19, %18 : vector<8x32xf32>
    %cst_18 = arith.constant dense<0x7F800000> : vector<8xf32>
    %21 = vector.multi_reduction <minimumf>, %20, %cst_18 [1] : vector<8x32xf32> to vector<8xf32>
    %22 = vector.shape_cast %21 : vector<8xf32> to vector<8x1xf32>
    %23 = tpu.iota {dimensions = array<i32: 1>} : vector<8x32xi32>
    %24 = vector.broadcast %22 : vector<8x1xf32> to vector<8x32xf32>
    %25 = arith.cmpf oeq, %20, %24 : vector<8x32xf32>
    %c32_i32 = arith.constant 32 : i32
    %26 = vector.broadcast %c32_i32 : i32 to vector<8x32xi32>
    %27 = arith.select %25, %23, %26 : vector<8x32xi1>, vector<8x32xi32>
    %cst_19 = arith.constant dense<2147483647> : vector<8xi32>
    %28 = vector.multi_reduction <minsi>, %27, %cst_19 [1] : vector<8x32xi32> to vector<8xi32>
    %29 = vector.shape_cast %28 : vector<8xi32> to vector<8x1xi32>
    %30 = vector.broadcast %29 : vector<8x1xi32> to vector<8x32xi32>
    %31 = arith.cmpi eq, %23, %30 : vector<8x32xi32>
    %32 = arith.extui %31 : vector<8x32xi1> to vector<8x32xi32>
    %33 = arith.sitofp %32 : vector<8x32xi32> to vector<8x32xf32>
    %cst_20 = arith.constant dense<0.000000e+00> : vector<8x16xf32>
    %34 = tpu.matmul %33, %14, %cst_20 {dimension_numbers = #tpu.dot_dimension_numbers<[1], [0], [0], [1], [0, 0, 1, 1], [], []>} : vector<8x32xf32>, vector<32x16xf32>, vector<8x16xf32> -> vector<8x16xf32>
    %c0_21 = arith.constant 0 : index
    %c80 = arith.constant 80 : index
    %35 = vector.load %arg16[%c0_21, %c80] : memref<8x131xf32, #tpu.memory_space<vmem>>, vector<8x16xf32>
    tpu.vector_store %arg16[%c0_21, %c80], %34 {strides = array<i32>} : memref<8x131xf32, #tpu.memory_space<vmem>>, vector<8x16xf32>,
    %36 = arith.subf %12, %34 : vector<8x16xf32>
    %c0_22 = arith.constant 0 : index
    %c48 = arith.constant 48 : index
    %37 = vector.load %arg16[%c0_22, %c48] : memref<8x131xf32, #tpu.memory_space<vmem>>, vector<8x16xf32>
    tpu.vector_store %arg16[%c0_22, %c48], %36 {strides = array<i32>} : memref<8x131xf32, #tpu.memory_space<vmem>>, vector<8x16xf32>,
    %c0_23 = arith.constant 0 : index
    %c0_24 = arith.constant 0 : index
    %38 = vector.load %arg8[%c0_23, %c0_24] : memref<32x16xf32, #tpu.memory_space<vmem>>, vector<32x16xf32>
    %c0_25 = arith.constant 0 : index
    %c0_26 = arith.constant 0 : index
    %39 = vector.load %arg9[%c0_25, %c0_26] : memref<1x32xf32, #tpu.memory_space<vmem>>, vector<1x32xf32>
    %cst_27 = arith.constant dense<0.000000e+00> : vector<8x32xf32>
    %40 = tpu.matmul %36, %38, %cst_27 {dimension_numbers = #tpu.dot_dimension_numbers<[1], [1], [0], [0], [0, 0, 1, 0], [], []>} : vector<8x16xf32>, vector<32x16xf32>, vector<8x32xf32> -> vector<8x32xf32>
    %cst_28 = arith.constant 2.000000e+00 : f32
    %41 = vector.broadcast %cst_28 : f32 to vector<8x32xf32>
    %42 = arith.mulf %41, %40 : vector<8x32xf32>
    %43 = vector.broadcast %39 : vector<1x32xf32> to vector<8x32xf32>
    %44 = arith.subf %43, %42 : vector<8x32xf32>
    %cst_29 = arith.constant dense<0x7F800000> : vector<8xf32>
    %45 = vector.multi_reduction <minimumf>, %44, %cst_29 [1] : vector<8x32xf32> to vector<8xf32>
    %46 = vector.shape_cast %45 : vector<8xf32> to vector<8x1xf32>
    %47 = tpu.iota {dimensions = array<i32: 1>} : vector<8x32xi32>
    %48 = vector.broadcast %46 : vector<8x1xf32> to vector<8x32xf32>
    %49 = arith.cmpf oeq, %44, %48 : vector<8x32xf32>
    %c32_i32_30 = arith.constant 32 : i32
    %50 = vector.broadcast %c32_i32_30 : i32 to vector<8x32xi32>
    %51 = arith.select %49, %47, %50 : vector<8x32xi1>, vector<8x32xi32>
    %cst_31 = arith.constant dense<2147483647> : vector<8xi32>
    %52 = vector.multi_reduction <minsi>, %51, %cst_31 [1] : vector<8x32xi32> to vector<8xi32>
    %53 = vector.shape_cast %52 : vector<8xi32> to vector<8x1xi32>
    %54 = vector.broadcast %53 : vector<8x1xi32> to vector<8x32xi32>
    %55 = arith.cmpi eq, %47, %54 : vector<8x32xi32>
    %56 = arith.extui %55 : vector<8x32xi1> to vector<8x32xi32>
    %57 = arith.sitofp %56 : vector<8x32xi32> to vector<8x32xf32>
    %cst_32 = arith.constant dense<0.000000e+00> : vector<8x16xf32>
    %58 = tpu.matmul %57, %38, %cst_32 {dimension_numbers = #tpu.dot_dimension_numbers<[1], [0], [0], [1], [0, 0, 1, 1], [], []>} : vector<8x32xf32>, vector<32x16xf32>, vector<8x16xf32> -> vector<8x16xf32>
    %c0_33 = arith.constant 0 : index
    %c96 = arith.constant 96 : index
    %59 = vector.load %arg16[%c0_33, %c96] : memref<8x131xf32, #tpu.memory_space<vmem>>, vector<8x16xf32>
    tpu.vector_store %arg16[%c0_33, %c96], %58 {strides = array<i32>} : memref<8x131xf32, #tpu.memory_space<vmem>>, vector<8x16xf32>,
    %60 = arith.subf %36, %58 : vector<8x16xf32>
    %c0_34 = arith.constant 0 : index
    %c64 = arith.constant 64 : index
    %61 = vector.load %arg16[%c0_34, %c64] : memref<8x131xf32, #tpu.memory_space<vmem>>, vector<8x16xf32>
    tpu.vector_store %arg16[%c0_34, %c64], %60 {strides = array<i32>} : memref<8x131xf32, #tpu.memory_space<vmem>>, vector<8x16xf32>,
    %c0_35 = arith.constant 0 : index
    %c0_36 = arith.constant 0 : index
    %62 = vector.load %arg10[%c0_35, %c0_36] : memref<32x16xf32, #tpu.memory_space<vmem>>, vector<32x16xf32>
    %c0_37 = arith.constant 0 : index
    %c0_38 = arith.constant 0 : index
    %63 = vector.load %arg11[%c0_37, %c0_38] : memref<1x32xf32, #tpu.memory_space<vmem>>, vector<1x32xf32>
    %cst_39 = arith.constant dense<0.000000e+00> : vector<8x32xf32>
    %64 = tpu.matmul %60, %62, %cst_39 {dimension_numbers = #tpu.dot_dimension_numbers<[1], [1], [0], [0], [0, 0, 1, 0], [], []>} : vector<8x16xf32>, vector<32x16xf32>, vector<8x32xf32> -> vector<8x32xf32>
    %cst_40 = arith.constant 2.000000e+00 : f32
    %65 = vector.broadcast %cst_40 : f32 to vector<8x32xf32>
    %66 = arith.mulf %65, %64 : vector<8x32xf32>
    %67 = vector.broadcast %63 : vector<1x32xf32> to vector<8x32xf32>
    %68 = arith.subf %67, %66 : vector<8x32xf32>
    %cst_41 = arith.constant dense<0x7F800000> : vector<8xf32>
    %69 = vector.multi_reduction <minimumf>, %68, %cst_41 [1] : vector<8x32xf32> to vector<8xf32>
    %70 = vector.shape_cast %69 : vector<8xf32> to vector<8x1xf32>
    %71 = tpu.iota {dimensions = array<i32: 1>} : vector<8x32xi32>
    %72 = vector.broadcast %70 : vector<8x1xf32> to vector<8x32xf32>
    %73 = arith.cmpf oeq, %68, %72 : vector<8x32xf32>
    %c32_i32_42 = arith.constant 32 : i32
    %74 = vector.broadcast %c32_i32_42 : i32 to vector<8x32xi32>
    %75 = arith.select %73, %71, %74 : vector<8x32xi1>, vector<8x32xi32>
    %cst_43 = arith.constant dense<2147483647> : vector<8xi32>
    %76 = vector.multi_reduction <minsi>, %75, %cst_43 [1] : vector<8x32xi32> to vector<8xi32>
    %77 = vector.shape_cast %76 : vector<8xi32> to vector<8x1xi32>
    %78 = vector.broadcast %77 : vector<8x1xi32> to vector<8x32xi32>
    %79 = arith.cmpi eq, %71, %78 : vector<8x32xi32>
    %80 = arith.extui %79 : vector<8x32xi1> to vector<8x32xi32>
    %81 = arith.sitofp %80 : vector<8x32xi32> to vector<8x32xf32>
    %cst_44 = arith.constant dense<0.000000e+00> : vector<8x16xf32>
    %82 = tpu.matmul %81, %62, %cst_44 {dimension_numbers = #tpu.dot_dimension_numbers<[1], [0], [0], [1], [0, 0, 1, 1], [], []>} : vector<8x32xf32>, vector<32x16xf32>, vector<8x16xf32> -> vector<8x16xf32>
    %c0_45 = arith.constant 0 : index
    %c112 = arith.constant 112 : index
    %83 = vector.load %arg16[%c0_45, %c112] : memref<8x131xf32, #tpu.memory_space<vmem>>, vector<8x16xf32>
    tpu.vector_store %arg16[%c0_45, %c112], %82 {strides = array<i32>} : memref<8x131xf32, #tpu.memory_space<vmem>>, vector<8x16xf32>,
    %84 = tpu.iota {dimensions = array<i32: 1>} : vector<8x3xi32>
    %c0_i32 = arith.constant 0 : i32
    %85 = vector.broadcast %c0_i32 : i32 to vector<8x3xi32>
    %86 = arith.cmpi eq, %84, %85 : vector<8x3xi32>
    %87 = vector.shape_cast %28 : vector<8xi32> to vector<8x1xi32>
    %c1_i32 = arith.constant 1 : i32
    %88 = vector.broadcast %c1_i32 : i32 to vector<8x3xi32>
    %89 = arith.cmpi eq, %84, %88 : vector<8x3xi32>
    %90 = vector.shape_cast %52 : vector<8xi32> to vector<8x1xi32>
    %91 = vector.shape_cast %76 : vector<8xi32> to vector<8x1xi32>
    %92 = vector.shape_cast %90 : vector<8x1xi32> to vector<8x1xi32>
    %93 = vector.broadcast %92 : vector<8x1xi32> to vector<8x3xi32>
    %94 = vector.shape_cast %91 : vector<8x1xi32> to vector<8x1xi32>
    %95 = vector.broadcast %94 : vector<8x1xi32> to vector<8x3xi32>
    %96 = arith.select %89, %93, %95 : vector<8x3xi1>, vector<8x3xi32>
    %97 = vector.shape_cast %87 : vector<8x1xi32> to vector<8x1xi32>
    %98 = vector.broadcast %97 : vector<8x1xi32> to vector<8x3xi32>
    %99 = arith.select %86, %98, %96 : vector<8x3xi1>, vector<8x3xi32>
    %100 = tpu.bitcast %99 : vector<8x3xi32> -> vector<8x3xf32>
    %c0_46 = arith.constant 0 : index
    %c128 = arith.constant 128 : index
    %101 = vector.load %arg16[%c0_46, %c128] : memref<8x131xf32, #tpu.memory_space<vmem>>, vector<8x3xf32>
    tpu.vector_store %arg16[%c0_46, %c128], %100 {strides = array<i32>} : memref<8x131xf32, #tpu.memory_space<vmem>>, vector<8x3xf32>,
    %102 = arith.addf %34, %58 : vector<8x16xf32>
    %103 = arith.addf %102, %82 : vector<8x16xf32>
    %104 = arith.subf %103, %12 : vector<8x16xf32>
    %105 = arith.addf %12, %104 : vector<8x16xf32>
    %c0_47 = arith.constant 0 : index
    %c0_48 = arith.constant 0 : index
    %106 = vector.load %arg12[%c0_47, %c0_48] : memref<16x32xf32, #tpu.memory_space<vmem>>, vector<16x32xf32>
    %cst_49 = arith.constant dense<0.000000e+00> : vector<8x32xf32>
    %107 = tpu.matmul %105, %106, %cst_49 {dimension_numbers = #tpu.dot_dimension_numbers<[1], [0], [0], [1], [0, 0, 1, 1], [], []>} : vector<8x16xf32>, vector<16x32xf32>, vector<8x32xf32> -> vector<8x32xf32>
    %c0_50 = arith.constant 0 : index
    %c0_51 = arith.constant 0 : index
    %108 = vector.load %arg13[%c0_50, %c0_51] : memref<1x32xf32, #tpu.memory_space<vmem>>, vector<1x32xf32>
    %109 = vector.broadcast %108 : vector<1x32xf32> to vector<8x32xf32>
    %110 = arith.addf %107, %109 : vector<8x32xf32>
    %111 = arith.negf %110 : vector<8x32xf32>
    %112 = math.exp %111 : vector<8x32xf32>
    %cst_52 = arith.constant 1.000000e+00 : f32
    %113 = vector.broadcast %cst_52 : f32 to vector<8x32xf32>
    %114 = arith.addf %113, %112 : vector<8x32xf32>
    %115 = arith.divf %113, %114 : vector<8x32xf32>
    %c0_53 = arith.constant 0 : index
    %c0_54 = arith.constant 0 : index
    %116 = vector.load %arg14[%c0_53, %c0_54] : memref<32x32xf32, #tpu.memory_space<vmem>>, vector<32x32xf32>
    %cst_55 = arith.constant dense<0.000000e+00> : vector<8x32xf32>
    %117 = tpu.matmul %115, %116, %cst_55 {dimension_numbers = #tpu.dot_dimension_numbers<[1], [0], [0], [1], [0, 0, 1, 1], [], []>} : vector<8x32xf32>, vector<32x32xf32>, vector<8x32xf32> -> vector<8x32xf32>
    %c0_56 = arith.constant 0 : index
    %c0_57 = arith.constant 0 : index
    %118 = vector.load %arg15[%c0_56, %c0_57] : memref<1x32xf32, #tpu.memory_space<vmem>>, vector<1x32xf32>
    %119 = vector.broadcast %118 : vector<1x32xf32> to vector<8x32xf32>
    %120 = arith.addf %117, %119 : vector<8x32xf32>
    %c0_58 = arith.constant 0 : index
    %c0_59 = arith.constant 0 : index
    %121 = vector.load %arg16[%c0_58, %c0_59] : memref<8x131xf32, #tpu.memory_space<vmem>>, vector<8x32xf32>
    tpu.vector_store %arg16[%c0_58, %c0_59], %120 {strides = array<i32>} : memref<8x131xf32, #tpu.memory_space<vmem>>, vector<8x32xf32>,
    return
  }
  func.func @transform_0(%arg0: i32) -> (i32, i32) {
    %c0_i32 = arith.constant 0 : i32
    %c0_i32_0 = arith.constant 0 : i32
    return %arg0, %c0_i32 : i32, i32
  }
  func.func @transform_1(%arg0: i32) -> (i32, i32) {
    %c0_i32 = arith.constant 0 : i32
    %c0_i32_0 = arith.constant 0 : i32
    %c0_i32_1 = arith.constant 0 : i32
    return %c0_i32, %c0_i32_0 : i32, i32
  }
  func.func @transform_2(%arg0: i32) -> (i32, i32) {
    %c0_i32 = arith.constant 0 : i32
    %c0_i32_0 = arith.constant 0 : i32
    %c0_i32_1 = arith.constant 0 : i32
    return %c0_i32, %c0_i32_0 : i32, i32
  }
  func.func @transform_3(%arg0: i32) -> (i32, i32) {
    %c0_i32 = arith.constant 0 : i32
    %c0_i32_0 = arith.constant 0 : i32
    %c0_i32_1 = arith.constant 0 : i32
    return %c0_i32, %c0_i32_0 : i32, i32
  }
  func.func @transform_4(%arg0: i32) -> (i32, i32) {
    %c0_i32 = arith.constant 0 : i32
    %c0_i32_0 = arith.constant 0 : i32
    %c0_i32_1 = arith.constant 0 : i32
    return %c0_i32, %c0_i32_0 : i32, i32
  }
  func.func @transform_5(%arg0: i32) -> (i32, i32) {
    %c0_i32 = arith.constant 0 : i32
    %c0_i32_0 = arith.constant 0 : i32
    %c0_i32_1 = arith.constant 0 : i32
    return %c0_i32, %c0_i32_0 : i32, i32
  }
  func.func @transform_6(%arg0: i32) -> (i32, i32) {
    %c0_i32 = arith.constant 0 : i32
    %c0_i32_0 = arith.constant 0 : i32
    %c0_i32_1 = arith.constant 0 : i32
    return %c0_i32, %c0_i32_0 : i32, i32
  }
  func.func @transform_7(%arg0: i32) -> (i32, i32) {
    %c0_i32 = arith.constant 0 : i32
    %c0_i32_0 = arith.constant 0 : i32
    %c0_i32_1 = arith.constant 0 : i32
    return %c0_i32, %c0_i32_0 : i32, i32
  }
  func.func @transform_8(%arg0: i32) -> (i32, i32) {
    %c0_i32 = arith.constant 0 : i32
    %c0_i32_0 = arith.constant 0 : i32
    %c0_i32_1 = arith.constant 0 : i32
    return %c0_i32, %c0_i32_0 : i32, i32
  }
  func.func @transform_9(%arg0: i32) -> (i32, i32) {
    %c0_i32 = arith.constant 0 : i32
    %c0_i32_0 = arith.constant 0 : i32
    %c0_i32_1 = arith.constant 0 : i32
    return %c0_i32, %c0_i32_0 : i32, i32
  }
  func.func @transform_10(%arg0: i32) -> (i32, i32) {
    %c0_i32 = arith.constant 0 : i32
    %c0_i32_0 = arith.constant 0 : i32
    %c0_i32_1 = arith.constant 0 : i32
    return %c0_i32, %c0_i32_0 : i32, i32
  }
  func.func @transform_11(%arg0: i32) -> (i32, i32) {
    %c0_i32 = arith.constant 0 : i32
    %c0_i32_0 = arith.constant 0 : i32
    %c0_i32_1 = arith.constant 0 : i32
    return %c0_i32, %c0_i32_0 : i32, i32
  }
  func.func @transform_12(%arg0: i32) -> (i32, i32) {
    %c0_i32 = arith.constant 0 : i32
    %c0_i32_0 = arith.constant 0 : i32
    %c0_i32_1 = arith.constant 0 : i32
    return %c0_i32, %c0_i32_0 : i32, i32
  }
  func.func @transform_13(%arg0: i32) -> (i32, i32) {
    %c0_i32 = arith.constant 0 : i32
    %c0_i32_0 = arith.constant 0 : i32
    %c0_i32_1 = arith.constant 0 : i32
    return %c0_i32, %c0_i32_0 : i32, i32
  }
  func.func @transform_14(%arg0: i32) -> (i32, i32) {
    %c0_i32 = arith.constant 0 : i32
    %c0_i32_0 = arith.constant 0 : i32
    %c0_i32_1 = arith.constant 0 : i32
    return %c0_i32, %c0_i32_0 : i32, i32
  }
  func.func @transform_15(%arg0: i32) -> (i32, i32) {
    %c0_i32 = arith.constant 0 : i32
    %c0_i32_0 = arith.constant 0 : i32
    return %arg0, %c0_i32 : i32, i32
  }
}

</mosaic_0001>

<bundles_post_ra>
// kernel: tpu_custom_call.1
= control target key start
LH: loop header
LB: loop body
LE: loop exit
PB: predicated region body
PF: predicated region fallthrough
CT: control target
= control target key end

     0   :  { %v1328_v3 = vmov 0.0|0.0   ;;  %vm1329_vm0 = vmmov 0   ;;  %v1330_v6 = vmov 0.0   ;;  %s1647_s0 = inlined_call_operand.vmem [shape: f32[8,32], index: 0, kind: input, shape index: {}]   ;;  %s1648_s1 = inlined_call_operand.vmem [shape: f32[32,32], index: 1, kind: input, shape index: {}]   ;;  %s1649_s2 = inlined_call_operand.vmem [shape: f32[1,32], index: 2, kind: input, shape index: {}]   ;;  %s1650_s3 = inlined_call_operand.vmem [shape: f32[32,16], index: 3, kind: input, shape index: {}]   ;;  %s1651_s4 = inlined_call_operand.vmem [shape: f32[1,16], index: 4, kind: input, shape index: {}]   ;;  %s1652_s5 = inlined_call_operand.vmem [shape: f32[32,16], index: 5, kind: input, shape index: {}]   ;;  %s1653_s6 = inlined_call_operand.vmem [shape: f32[1,32], index: 6, kind: input, shape index: {}]   ;;  %s1654_s7 = inlined_call_operand.vmem [shape: f32[32,16], index: 7, kind: input, shape index: {}]   ;;  %s1655_s8 = inlined_call_operand.vmem [shape: f32[1,32], index: 8, kind: input, shape index: {}]   ;;  %s1656_s9 = inlined_call_operand.vmem [shape: f32[32,16], index: 9, kind: input, shape index: {}]   ;;  %s1657_s10 = inlined_call_operand.vmem [shape: f32[1,32], index: 10, kind: input, shape index: {}]   ;;  %s1658_s11 = inlined_call_operand.vmem [shape: f32[16,32], index: 11, kind: input, shape index: {}]   ;;  %s1659_s12 = inlined_call_operand.vmem [shape: f32[1,32], index: 12, kind: input, shape index: {}]   ;;  %s1660_s13 = inlined_call_operand.vmem [shape: f32[32,32], index: 13, kind: input, shape index: {}]   ;;  %s1661_s14 = inlined_call_operand.vmem [shape: f32[1,32], index: 14, kind: input, shape index: {}]   ;;  %s1662_s15 = inlined_call_operand.hbm [shape: f32[8,131], index: 15, kind: output, shape index: {}]  }
   0x1   :  { %v52_v0 = vld [vmem:[%s1648_s1] sm:$0xff]  ;;  %v53_v1 = vld [vmem:[%s1648_s1 + $0x8] sm:$0xff]  ;;  %v54_v2 = vld [vmem:[%s1648_s1 + $0x10] sm:$0xff]  ;;  %1227 = vmatprep.subr.bf16.mxu0 %v1328_v3  ;;  %1129 = vmatprep.mubr.msk.f32.mxu0 %vm1329_vm0, %v1330_v6 }
   0x2   :  { %v1228_v4 = vpack.c.bf16 %v53_v1, %v52_v0  ;;  %v55_v5 = vld [vmem:[%s1648_s1 + $0x18] sm:$0xff]  ;;  %v138_v7 = vld [vmem:[%s1650_s3] sm:$0xff]  ;;  %1233 = vmatprep.subr.bf16.mxu1 %v1328_v3  ;;  %v139_v8 = vld [vmem:[%s1650_s3 + $0x8] sm:$0xff]  ;;  %1140 = vmatprep.mubr.msk.f32.mxu1 %vm1329_vm0, %v1330_v6 }
   0x3   :  { %20 = vsyncpa [#allocation3], 0  ;;  %v1231_v9 = vpack.c.bf16 %v55_v5, %v54_v2  ;;  %v1234_v10 = vpack.c.bf16 %v139_v8, %v138_v7  ;;  %v51_v11 = vld [vmem:[%s1647_s0] sm:$0xff]  ;;  %vm63_vm1 = vcmask 261120   ;;  %v140_v12 = vld [vmem:[%s1650_s3 + $0x10] sm:$0xff]  ;;  %vm233_vm2 = vcmask 130048  }
   0x4   :  { %1229 = vmatpush3.bf16.msra.mxu0 %v1228_v4  ;;  %v141_v13 = vld [vmem:[%s1650_s3 + $0x18] sm:$0xff]  ;;  %v228_v15 = vld [vmem:[%s1652_s5] sm:$0xff]  ;;  %v229_v16 = vld [vmem:[%s1652_s5 + $0x8] sm:$0xff]  ;;  %v329_v37 = vlaneseq  ;;  %s1331_s27 = smov 32   ;;  %s1334_s28 = smov 64   ;;  %vm226_vm12 = vcmask 392448  }
   0x5   :  { %1230 = vmatprep.subr.bf16.mxu0 %v1328_v3  ;;  %1235 = vmatpush3.bf16.msra.mxu1 %v1234_v10  ;;  %v1237_v14 = vpack.c.bf16 %v141_v13, %v140_v12  ;;  %v1240_v17 = vpack.c.bf16 %v229_v16, %v228_v15  ;;  %vm1466_vm3 = vmpackc.low %vm233_vm2, %vm233_vm2  ;;  %v230_v19 = vld [vmem:[%s1652_s5 + $0x10] sm:$0xff]  ;;  %v231_v20 = vld [vmem:[%s1652_s5 + $0x18] sm:$0xff]  ;;  %s1332_s5 = smov 48   ;;  %vm428_vm13 = vcmask 786048   ;;  %vm435_vm15 = vcmask 523648   ;;  %s1336_s30 = smov 112  }
   0x6   :  { %1236 = vmatprep.subr.bf16.mxu1 %v1328_v3  ;;  %v1244_v21 = vpack.c.bf16 %v231_v20, %v230_v19  ;;  %v1040_v22 = vld [vmem:[%s1649_s2] ss:$0 sm:$0xff]  ;;  %v1503_v38 = vand.u32 127, %v329_v37  ;;  %v438_v49 = vld [vmem:[%s1654_s7 + $0x8] sm:$0xff]  ;;  %v439_v51 = vld [vmem:[%s1654_s7 + $0x10] sm:$0xff]  ;;  %s1335_s2 = smov 80  }
   0x7   :  { %v1042_v27 = vld [vmem:[%s1651_s4] ss:$0 sm:$0xff]  ;;  %v440_v52 = vld [vmem:[%s1654_s7 + $0x18] sm:$0xff]  ;;  %v645_v20 = vld [vmem:[%s1656_s9 + $0x10] sm:$0xff]  ;;  %s1337_s3 = smov [#allocation2]  }
   0x8   :  { %1232 = vmatpush3.bf16.msra.mxu0 %v1231_v9  ;;  %v1049_v32 = vld [vmem:[%s1653_s6] ss:$0 sm:$0xff]  ;;  %v1258_v53 = vpack.c.bf16 %v440_v52, %v439_v51  ;;  %vm843_vm14 = vcmp.eq.s32.totalorder %v1503_v38, 1  ;;  %s1032_s23 = sshll.u32 %s1337_s3, 4  ;;  %s1033_s23 = int_to_ptr.vmem [resolvable:$true] %s1032_s23 }
   0x9   :  { %1239 = vmatprep.subr.bf16.mxu0 %v1328_v3  ;;  %1238 = vmatpush3.bf16.msra.mxu1 %v1237_v14  ;;  %v437_v48 = vld [vmem:[%s1654_s7] sm:$0xff]  ;;  %p1309_p1 = scmp.lt.s32.totalorder %s1033_s23, %s1033_s23 }
   0xa   :  { %1247 = vmatprep.subr.bf16.mxu1 %v1328_v3  ;;  %v1254_v50 = vpack.c.bf16 %v438_v49, %v437_v48  ;;  %v1057_v0 = vld [vmem:[%s1655_s8] ss:$0 sm:$0xff] }
   0xb   :  { %1130 = vmatmul.mubr.msk.f32.vlgmr.msra.gmra.mrb[0].mxu0 %vm63_vm1, %v51_v11  ;;  %v643_v16 = vld [vmem:[%s1656_s9] sm:$0xff] }
   0xc   :  { %1151 = vmatprep.mubr.msk.f32.mxu0 %vm1329_vm0, %v1330_v6 }
  0x11   :  { %1242 = vmatpush3.bf16.xpose.msk.msra.mxu0 %vm1466_vm3, %v1240_v17 }
  0x12   :  { %1243 = vmatprep.subr.bf16.mxu0 %v1328_v3 }
  0x19   :  { %1246 = vmatpush3.bf16.xpose.msk.msra.mxu0 %vm1466_vm3, %v1244_v21 }
  0x1a   :  { %1261 = vmatprep.subr.bf16.mxu0 %v1328_v3 }
  0xde   :  { %v133_v23 = vpop.f32.mrb[0].mxu0 }
  0xdf   :  { %v134_v24 = vadd.f32 %v1040_v22, %v133_v23  ;;  %v1131_v25 = vpop.f32.mrb[1].mxu0 }
  0xe1   :  { %v137_v26 = vmax.f32 %v134_v24, 0.0 }
  0xe3   :  { %1141 = vmatmul.mubr.msk.f32.vlgmr.msra.gmra.mrb[0].mxu1 %vm63_vm1, %v137_v26 }
  0xe4   :  { %1249 = vmatpush3.bf16.msra.mxu1 %v1240_v17  ;;  %1162 = vmatprep.mubr.msk.f32.mxu1 %vm1329_vm0, %v1330_v6  ;;  %v644_v17 = vld [vmem:[%s1656_s9 + $0x8] sm:$0xff] }
  0xe5   :  { %1250 = vmatprep.subr.bf16.mxu1 %v1328_v3  ;;  %v1268_v19 = vpack.c.bf16 %v644_v17, %v643_v16 }
  0xe8   :  { %1252 = vmatpush3.bf16.msra.mxu1 %v1244_v21  ;;  %v646_v21 = vld [vmem:[%s1656_s9 + $0x18] sm:$0xff] }
  0xe9   :  { %1253 = vmatprep.subr.bf16.mxu1 %v1328_v3  ;;  %v1272_v22 = vpack.c.bf16 %v646_v21, %v645_v20 }
 0x1b6   :  { %v218_v28 = vpop.f32.mrb[0].mxu1 }
 0x1b7   :  { %v1493_v29 = vadd.f32 %v1042_v27, %v218_v28  ;;  %v1142_v30 = vpop.f32.mrb[1].mxu1 }
 0x1b9   :  { %1152 = vmatmul.mubr.msk.f32.vlgmr.msra.gmra.mrb[2].mxu0 %vm233_vm2, %v1493_v29 }
 0x1ba   :  { %1184 = vmatprep.mubr.msk.f32.mxu0 %vm1329_vm0, %v1330_v6  ;;  %1263 = vmatpush3.bf16.msra.mxu0 %v1254_v50 }
 0x1bb   :  { %1264 = vmatprep.subr.bf16.mxu0 %v1328_v3 }
 0x1be   :  { %1266 = vmatpush3.bf16.msra.mxu0 %v1258_v53 }
 0x1bf   :  { %1267 = vmatprep.subr.bf16.mxu0 %v1328_v3 }
 0x28c   :  { %v314_v31 = vpop.f32.mrb[2].mxu0 }
 0x28d   :  { %v318_v33 = vmul.f32 2.0, %v314_v31  ;;  %v1153_v34 = vpop.f32.mrb[3].mxu0 }
 0x28f   :  { %v325_v35 = vsub.f32 %v1049_v32, %v318_v33 }
 0x291   :  { %v326_v36 = vsel %vm63_vm1, %v325_v35, inf }
 0x292   :  { %327 = vmin.xlane.f32.xlu0 %v326_v36 }
 0x31f   :  { %v328_v39 = vpop.xlane.xlu0 %327 }
 0x320   :  { %vm331_vm4 = vcmp.eq.f32.partialorder %v325_v35, %v328_v39  ;;  %v1065_v35 = vld [vmem:[%s1657_s10] ss:$0 sm:$0xff]  ;;  %s1333_s10 = smov 96  }
 0x321   :  { %v332_v40 = vsel %vm331_vm4, %v1503_v38, 32  ;;  %vm634_vm4 = vcmask 917248  }
 0x322   :  { %v333_v41 = vsel %vm63_vm1, %v332_v40, 2147483647 }
 0x323   :  { %v335_v42 = vshra.s32 %v333_v41, 16  ;;  %v334_v44 = vand.u32 65535, %v333_v41 }
 0x325   :  { %v337_v43 = vcvt.s32.f32 %v335_v42  ;;  %v336_v46 = vcvt.s32.f32 %v334_v44 }
 0x327   :  { %338 = vmin.xlane.f32.xlu0 %v337_v43 }
 0x3b4   :  { %v339_v45 = vpop.xlane.xlu0 %338 }
 0x3b5   :  { %vm340_vm5 = vcmp.eq.f32.partialorder %v337_v43, %v339_v45  ;;  %v345_v54 = vcvt.f32.s32 %v339_v45 }
 0x3b6   :  { %v341_v47 = vsel %vm340_vm5, %v336_v46, inf  ;;  %vm847_vm5 = vcmask 23552  }
 0x3b7   :  { %342 = vmin.xlane.f32.xlu1 %v341_v47  ;;  %v346_v56 = vshll.u32 %v345_v54, 16 }
 0x444   :  { %v343_v55 = vpop.xlane.xlu1 %342 }
 0x445   :  { %v344_v57 = vcvt.f32.s32 %v343_v55 }
 0x447   :  { %v1521_v58 = vadd.s32 %v346_v56, %v344_v57 }
 0x449   :  { %vm348_vm6 = vcmp.eq.s32.totalorder %v1503_v38, %v1521_v58 }
 0x44a   :  { %v1050_v59 = vsel %vm348_vm6, 1.0, %v1330_v6 }
 0x44b   :  { %1163 = vmatmul.mubr.msk.f32.vlgmr.msra.gmra.mrb[2].mxu1 %vm63_vm1, %v1050_v59 }
 0x44c   :  { %1256 = vmatpush3.bf16.xpose.msk.msra.mxu1 %vm1466_vm3, %v1254_v50  ;;  %1173 = vmatprep.mubr.msk.f32.mxu1 %vm1329_vm0, %v1330_v6 }
 0x44d   :  { %1257 = vmatprep.subr.bf16.mxu1 %v1328_v3 }
 0x454   :  { %1260 = vmatpush3.bf16.xpose.msk.msra.mxu1 %vm1466_vm3, %v1258_v53 }
 0x455   :  { %1275 = vmatprep.subr.bf16.mxu1 %v1328_v3 }
 0x51e   :  { %v1535_v60 = vpop.f32.mrb[2].mxu1 }
 0x51f   :  { %v1539_v61 = vsub.f32 %v1493_v29, %v1535_v60  ;;  %v1164_v62 = vpop.f32.mrb[3].mxu1 }
 0x521   :  { %1174 = vmatmul.mubr.msk.f32.vlgmr.msra.gmra.mrb[4].mxu1 %vm233_vm2, %v1539_v61 }
 0x522   :  { %1206 = vmatprep.mubr.msk.f32.mxu1 %vm1329_vm0, %v1330_v6  ;;  %1277 = vmatpush3.bf16.msra.mxu1 %v1268_v19 }
 0x523   :  { %1278 = vmatprep.subr.bf16.mxu1 %v1328_v3 }
 0x526   :  { %1280 = vmatpush3.bf16.msra.mxu1 %v1272_v22 }
 0x527   :  { %1281 = vmatprep.subr.bf16.mxu1 %v1328_v3 }
 0x5f4   :  { %v522_v63 = vpop.f32.mrb[4].mxu1 }
 0x5f5   :  { %v526_v1 = vmul.f32 2.0, %v522_v63  ;;  %v1175_v2 = vpop.f32.mrb[5].mxu1  ;;  %v854_v63 = vld [vmem:[%s1658_s11 + $0x8] sm:$0xff] }
 0x5f7   :  { %v533_v4 = vsub.f32 %v1057_v0, %v526_v1 }
 0x5f9   :  { %v534_v5 = vsel %vm63_vm1, %v533_v4, inf }
 0x5fa   :  { %535 = vmin.xlane.f32.xlu1 %v534_v5 }
 0x687   :  { %v536_v7 = vpop.xlane.xlu1 %535 }
 0x688   :  { %vm537_vm7 = vcmp.eq.f32.partialorder %v533_v4, %v536_v7  ;;  %v941_v7 = vld [vmem:[%s1660_s13] sm:$0xff] }
 0x689   :  { %v538_v8 = vsel %vm537_vm7, %v1503_v38, 32  ;;  %vm641_vm7 = vcmask 654848  }
 0x68a   :  { %v539_v9 = vsel %vm63_vm1, %v538_v8, 2147483647  ;;  %v942_v8 = vld [vmem:[%s1660_s13 + $0x8] sm:$0xff] }
 0x68b   :  { %v541_v10 = vshra.s32 %v539_v9, 16  ;;  %v540_v12 = vand.u32 65535, %v539_v9  ;;  %v943_v9 = vld [vmem:[%s1660_s13 + $0x10] sm:$0xff] }
 0x68d   :  { %v543_v11 = vcvt.s32.f32 %v541_v10  ;;  %v542_v14 = vcvt.s32.f32 %v540_v12  ;;  %v1285_v10 = vpack.c.bf16 %v942_v8, %v941_v7  ;;  %v1068_v12 = vld [vmem:[%s1659_s12] ss:$0 sm:$0xff]  ;;  %s1304_s12 = scalar_lea.vmem %s1033_s23, 256 }
 0x68e   :  { %p1305_p0 = scmp.ne.s32.totalorder %s1033_s23, %s1304_s12  ;;  %p1310_p2 = scmp.lt.s32.totalorder %s1304_s12, %s1304_s12 }
 0x68f   :  { %544 = vmin.xlane.f32.xlu0 %v543_v11 }
 0x690   :  { %p1311_p3 = por %p1310_p2, %p1309_p1 }
 0x692   :  { %p1312_p4 = pnand %p1311_p3, %p1305_p0 }
 0x71c   :  { %v545_v13 = vpop.xlane.xlu0 %544 }
 0x71d   :  { %vm546_vm8 = vcmp.eq.f32.partialorder %v543_v11, %v545_v13  ;;  %v551_v23 = vcvt.f32.s32 %v545_v13 }
 0x71e   :  { %v547_v15 = vsel %vm546_vm8, %v542_v14, inf }
 0x71f   :  { %548 = vmin.xlane.f32.xlu1 %v547_v15  ;;  %v552_v25 = vshll.u32 %v551_v23, 16 }
 0x7ac   :  { %v549_v24 = vpop.xlane.xlu1 %548 }
 0x7ad   :  { %v550_v26 = vcvt.f32.s32 %v549_v24 }
 0x7af   :  { %v1565_v27 = vadd.s32 %v552_v25, %v550_v26 }
 0x7b1   :  { %vm554_vm9 = vcmp.eq.s32.totalorder %v1503_v38, %v1565_v27 }
 0x7b2   :  { %v1058_v28 = vsel %vm554_vm9, 1.0, %v1330_v6 }
 0x7b3   :  { %1185 = vmatmul.mubr.msk.f32.vlgmr.msra.gmra.mrb[4].mxu0 %vm63_vm1, %v1058_v28 }
 0x7b4   :  { %1270 = vmatpush3.bf16.xpose.msk.msra.mxu0 %vm1466_vm3, %v1268_v19  ;;  %1195 = vmatprep.mubr.msk.f32.mxu0 %vm1329_vm0, %v1330_v6 }
 0x7b5   :  { %1271 = vmatprep.subr.bf16.mxu0 %v1328_v3 }
 0x7bc   :  { %1274 = vmatpush3.bf16.xpose.msk.msra.mxu0 %vm1466_vm3, %v1272_v22  ;;  %vm842_vm3 = vcmp.eq.s32.totalorder %v1503_v38, 0 }
 0x886   :  { %v626_v30 = vpop.f32.mrb[4].mxu0 }
 0x887   :  { %v636_v31 = vsub.f32 %v1539_v61, %v626_v30  ;;  %v1580_v32 = vadd.f32 %v626_v30, %v1535_v60  ;;  %v1186_v33 = vpop.f32.mrb[5].mxu0 }
 0x889   :  { %1196 = vmatmul.mubr.msk.f32.vlgmr.msra.gmra.mrb[6].mxu0 %vm233_vm2, %v636_v31 }
 0x95c   :  { %v728_v34 = vpop.f32.mrb[6].mxu0 }
 0x95d   :  { %v732_v36 = vmul.f32 2.0, %v728_v34  ;;  %v1197_v37 = vpop.f32.mrb[7].mxu0 }
 0x95f   :  { %v739_v39 = vsub.f32 %v1065_v35, %v732_v36 }
 0x961   :  { %v740_v18 = vsel %vm63_vm1, %v739_v39, inf }
 0x962   :  { %741 = vmin.xlane.f32.xlu0 %v740_v18 }
 0x9ef   :  { %v742_v40 = vpop.xlane.xlu0 %741 }
 0x9f0   :  { %vm743_vm10 = vcmp.eq.f32.partialorder %v739_v39, %v742_v40 }
 0x9f1   :  { %v744_v41 = vsel %vm743_vm10, %v1503_v38, 32 }
 0x9f2   :  { %v745_v42 = vsel %vm63_vm1, %v744_v41, 2147483647 }
 0x9f3   :  { %v747_v43 = vshra.s32 %v745_v42, 16  ;;  %v746_v45 = vand.u32 65535, %v745_v42 }
 0x9f5   :  { %v749_v44 = vcvt.s32.f32 %v747_v43  ;;  %v748_v47 = vcvt.s32.f32 %v746_v45 }
 0x9f7   :  { %750 = vmin.xlane.f32.xlu1 %v749_v44 }
 0xa08   :  { %223 = vrot.lane.b32.xlu1 %v1493_v29, %s1331_s27 }
 0xa0c   :  { %432 = vrot.lane.b32.xlu1 %v1539_v61, %s1332_s5 }
 0xa10   :  { %631 = vrot.lane.b32.xlu1 %v626_v30, %s1333_s10 }
 0xa14   :  { %638 = vrot.lane.b32.xlu1 %v636_v31, %s1334_s28 }
 0xa84   :  { %v751_v46 = vpop.xlane.xlu1 %750 }
 0xa85   :  { %vm752_vm11 = vcmp.eq.f32.partialorder %v749_v44, %v751_v46  ;;  %v757_v51 = vcvt.f32.s32 %v751_v46 }
 0xa86   :  { %v753_v48 = vsel %vm752_vm11, %v748_v47, inf }
 0xa87   :  { %754 = vmin.xlane.f32.xlu0 %v753_v48  ;;  %v758_v53 = vshll.u32 %v757_v51, 16 }
 0xa88   :  { %v224_v49 = vpop.permute.xlu1 %223 }
 0xa89   :  { %227 = vst.msk [vmem:[#allocation2] sm:$0xff] %vm226_vm12, %v224_v49 }
 0xa8c   :  { %v433_v50 = vpop.permute.xlu1 %432 }
 0xa90   :  { %v632_v54 = vpop.permute.xlu1 %631 }
 0xa94   :  { %v639_v62 = vpop.permute.xlu1 %638 }
 0xa9d   :  { %425 = vrot.lane.b32.xlu0 %v1535_v60, %s1335_s2 }
 0xb14   :  { %v755_v52 = vpop.xlane.xlu0 %754 }
 0xb15   :  { %v756_v55 = vcvt.f32.s32 %v755_v52 }
 0xb17   :  { %v759_v56 = vadd.s32 %v758_v53, %v756_v55 }
 0xb18   :  { %v426_v57 = vpop.permute.xlu0 %425 }
 0xb19   :  { %vm760_vm6 = vcmp.eq.s32.totalorder %v1503_v38, %v759_v56  ;;  %429 = vst.msk [vmem:[#allocation2] sm:$0xff] %vm428_vm13, %v426_v57  ;;  %v844_v59 = vsel %vm843_vm14, %v1565_v27, %v759_v56  ;;  %v853_v38 = vld [vmem:[%s1658_s11] sm:$0xff] }
 0xb1a   :  { %v1066_v60 = vsel %vm760_vm6, 1.0, %v1330_v6  ;;  %436 = vst.msk [vmem:[#allocation2] sm:$0xff] %vm435_vm15, %v433_v50  ;;  %v845_v61 = vsel %vm842_vm3, %v1521_v58, %v844_v59  ;;  %v1282_v0 = vpack.c.bf16 %v854_v63, %v853_v38 }
 0xb1b   :  { %1207 = vmatmul.mubr.msk.f32.vlgmr.msra.gmra.mrb[6].mxu1 %vm63_vm1, %v1066_v60  ;;  %635 = vst.msk [vmem:[#allocation2] sm:$0xff] %vm634_vm4, %v632_v54 }
 0xb1c   :  { %848 = vst.msk [vmem:[#allocation2 + $0x8] sm:$0xff] %vm847_vm5, %v845_v61  ;;  %1213 = vmatprep.mubr.msk.f32.mxu1 %vm1329_vm0, %v1330_v6  ;;  %1283 = vmatpush3.bf16.msra.mxu1 %v1282_v0 }
 0xb1d   :  { %642 = vst.msk [vmem:[#allocation2] sm:$0xff] %vm641_vm7, %v639_v62  ;;  %1284 = vmatprep.subr.bf16.mxu1 %v1328_v3 }
 0xbee   :  { %v832_v58 = vpop.f32.mrb[6].mxu1 }
 0xbef   :  { %v850_v1 = vadd.f32 %v1580_v32, %v832_v58  ;;  %837 = vrot.lane.b32.xlu0 %v832_v58, %s1336_s30  ;;  %v1208_v2 = vpop.f32.mrb[7].mxu1 }
 0xbf1   :  { %v851_v4 = vsub.f32 %v850_v1, %v1493_v29 }
 0xbf3   :  { %v852_v5 = vadd.f32 %v851_v4, %v1493_v29  ;;  %v944_v29 = vld [vmem:[%s1660_s13 + $0x18] sm:$0xff] }
 0xbf4   :  { %v1288_v11 = vpack.c.bf16 %v944_v29, %v943_v9 }
 0xbf5   :  { %1214 = vmatmul.mubr.msk.f32.vlgmr.msra.gmra.mrb[8].mxu1 %vm233_vm2, %v852_v5 }
 0xbf6   :  { %1224 = vmatprep.mubr.msk.f32.mxu1 %vm1329_vm0, %v1330_v6  ;;  %1286 = vmatpush3.bf16.msra.mxu1 %v1285_v10  ;;  %vm840_vm0 = vcmask 1048448  }
 0xbf7   :  { %1287 = vmatprep.subr.bf16.mxu1 %v1328_v3  ;;  %v1071_v3 = vld [vmem:[%s1661_s14] ss:$0 sm:$0xff] }
 0xbfa   :  { %1289 = vmatpush3.bf16.msra.mxu1 %v1288_v11 }
 0xc61   :  { %v838_v6 = vpop.permute.xlu0 %837 }
 0xc62   :  { %841 = vst.msk [vmem:[#allocation2] sm:$0xff] %vm840_vm0, %v838_v6 }
 0xcc8   :  { %v931_v13 = vpop.f32.mrb[8].mxu1 }
 0xcc9   :  { %v932_v14 = vadd.f32 %v1068_v12, %v931_v13  ;;  %v1215_v15 = vpop.f32.mrb[9].mxu1 }
 0xccb   :  { %v1070_v16 = vmul.f32 -1.442695, %v932_v14 }
 0xccd   :  { %1300 = vpow2.f32 %v1070_v16 }
 0xcd7   :  { %v1301_v17 = vpop.eup %1300 }
 0xcd8   :  { %v938_v19 = vadd.f32 1.0, %v1301_v17 }
 0xcda   :  { %1302 = vrcp.f32 %v938_v19 }
 0xce4   :  { %v1303_v20 = vpop.eup %1302 }
 0xce5   :  { %1225 = vmatmul.mubr.msk.f32.vlgmr.msra.gmra.mrb[10].mxu1 %vm63_vm1, %v1303_v20 }
 0xdb8   :  { %v1021_v21 = vpop.f32.mrb[10].mxu1 }
 0xdb9   :  { %v1022_v22 = vadd.f32 %v1071_v3, %v1021_v21  ;;  %v1226_v23 = vpop.f32.mrb[11].mxu1 }
 0xdbb   :  { %1025 = vst.msk [vmem:[#allocation2] sm:$0xff] %vm63_vm1, %v1022_v22 }
 0xdbc   :  { %1315 = shalt.err (!%p1312_p4)
}
 0xdbd   :  { %s1316_s9 = scalar_lea.hbm %s1662_s15, 256 }
 0xdbe   :  { %p1317_p5 = scmp.ne.s32.totalorder %s1662_s15, %s1316_s9  ;;  %p1320_p6 = scmp.lt.u32.totalorder %s1316_s9, %s1662_s15 }
 0xdc0   :  { %p1322_p7 = pnand %p1320_p6, %p1317_p5 }
 0xdc2   :  { %1325 = shalt.err (!%p1322_p7)
}
 0xdc3   :  { %1035 = dma.vmem_to_hbm [thread:$0]  %s1033_s23, 256, %s1662_s15, [#allocation3]  }
 0xdc4   :  { %1326 = dma.done.wait [#allocation3], 256  }
 0xdc5   :  { %1327 = vsyncadd [#allocation3], 4294967040 }
 0xdc6   :  { %1039 = vsyncpa [#allocation3], 1 }

// kernel: tpu_custom_call.1
= control target key start
LH: loop header
LB: loop body
LE: loop exit
PB: predicated region body
PF: predicated region fallthrough
CT: control target
= control target key end

     0   :  { %v1328_v3 = vmov 0.0|0.0   ;;  %vm1329_vm0 = vmmov 0   ;;  %v1330_v6 = vmov 0.0   ;;  %s1647_s0 = inlined_call_operand.vmem [shape: f32[8,32], index: 0, kind: input, shape index: {}]   ;;  %s1648_s1 = inlined_call_operand.vmem [shape: f32[32,32], index: 1, kind: input, shape index: {}]   ;;  %s1649_s2 = inlined_call_operand.vmem [shape: f32[1,32], index: 2, kind: input, shape index: {}]   ;;  %s1650_s3 = inlined_call_operand.vmem [shape: f32[32,16], index: 3, kind: input, shape index: {}]   ;;  %s1651_s4 = inlined_call_operand.vmem [shape: f32[1,16], index: 4, kind: input, shape index: {}]   ;;  %s1652_s5 = inlined_call_operand.vmem [shape: f32[32,16], index: 5, kind: input, shape index: {}]   ;;  %s1653_s6 = inlined_call_operand.vmem [shape: f32[1,32], index: 6, kind: input, shape index: {}]   ;;  %s1654_s7 = inlined_call_operand.vmem [shape: f32[32,16], index: 7, kind: input, shape index: {}]   ;;  %s1655_s8 = inlined_call_operand.vmem [shape: f32[1,32], index: 8, kind: input, shape index: {}]   ;;  %s1656_s9 = inlined_call_operand.vmem [shape: f32[32,16], index: 9, kind: input, shape index: {}]   ;;  %s1657_s10 = inlined_call_operand.vmem [shape: f32[1,32], index: 10, kind: input, shape index: {}]   ;;  %s1658_s11 = inlined_call_operand.vmem [shape: f32[16,32], index: 11, kind: input, shape index: {}]   ;;  %s1659_s12 = inlined_call_operand.vmem [shape: f32[1,32], index: 12, kind: input, shape index: {}]   ;;  %s1660_s13 = inlined_call_operand.vmem [shape: f32[32,32], index: 13, kind: input, shape index: {}]   ;;  %s1661_s14 = inlined_call_operand.vmem [shape: f32[1,32], index: 14, kind: input, shape index: {}]   ;;  %s1662_s15 = inlined_call_operand.hbm [shape: f32[8,131], index: 15, kind: output, shape index: {}]  }
   0x1   :  { %v52_v0 = vld [vmem:[%s1648_s1] sm:$0xff]  ;;  %v53_v1 = vld [vmem:[%s1648_s1 + $0x8] sm:$0xff]  ;;  %v54_v2 = vld [vmem:[%s1648_s1 + $0x10] sm:$0xff]  ;;  %1227 = vmatprep.subr.bf16.mxu0 %v1328_v3  ;;  %1129 = vmatprep.mubr.msk.f32.mxu0 %vm1329_vm0, %v1330_v6 }
   0x2   :  { %v1228_v4 = vpack.c.bf16 %v53_v1, %v52_v0  ;;  %v55_v5 = vld [vmem:[%s1648_s1 + $0x18] sm:$0xff]  ;;  %v138_v7 = vld [vmem:[%s1650_s3] sm:$0xff]  ;;  %1233 = vmatprep.subr.bf16.mxu1 %v1328_v3  ;;  %v139_v8 = vld [vmem:[%s1650_s3 + $0x8] sm:$0xff]  ;;  %1140 = vmatprep.mubr.msk.f32.mxu1 %vm1329_vm0, %v1330_v6 }
   0x3   :  { %20 = vsyncpa [#allocation3], 0  ;;  %v1231_v9 = vpack.c.bf16 %v55_v5, %v54_v2  ;;  %v1234_v10 = vpack.c.bf16 %v139_v8, %v138_v7  ;;  %v51_v11 = vld [vmem:[%s1647_s0] sm:$0xff]  ;;  %vm63_vm1 = vcmask 261120   ;;  %v140_v12 = vld [vmem:[%s1650_s3 + $0x10] sm:$0xff]  ;;  %vm233_vm2 = vcmask 130048  }
   0x4   :  { %1229 = vmatpush3.bf16.msra.mxu0 %v1228_v4  ;;  %v141_v13 = vld [vmem:[%s1650_s3 + $0x18] sm:$0xff]  ;;  %v228_v15 = vld [vmem:[%s1652_s5] sm:$0xff]  ;;  %v229_v16 = vld [vmem:[%s1652_s5 + $0x8] sm:$0xff]  ;;  %v329_v37 = vlaneseq  ;;  %s1331_s27 = smov 32   ;;  %s1334_s28 = smov 64   ;;  %vm226_vm12 = vcmask 392448  }
   0x5   :  { %1230 = vmatprep.subr.bf16.mxu0 %v1328_v3  ;;  %1235 = vmatpush3.bf16.msra.mxu1 %v1234_v10  ;;  %v1237_v14 = vpack.c.bf16 %v141_v13, %v140_v12  ;;  %v1240_v17 = vpack.c.bf16 %v229_v16, %v228_v15  ;;  %vm1466_vm3 = vmpackc.low %vm233_vm2, %vm233_vm2  ;;  %v230_v19 = vld [vmem:[%s1652_s5 + $0x10] sm:$0xff]  ;;  %v231_v20 = vld [vmem:[%s1652_s5 + $0x18] sm:$0xff]  ;;  %s1332_s5 = smov 48   ;;  %vm428_vm13 = vcmask 786048   ;;  %vm435_vm15 = vcmask 523648   ;;  %s1336_s30 = smov 112  }
   0x6   :  { %1236 = vmatprep.subr.bf16.mxu1 %v1328_v3  ;;  %v1244_v21 = vpack.c.bf16 %v231_v20, %v230_v19  ;;  %v1040_v22 = vld [vmem:[%s1649_s2] ss:$0 sm:$0xff]  ;;  %v1503_v38 = vand.u32 127, %v329_v37  ;;  %v438_v49 = vld [vmem:[%s1654_s7 + $0x8] sm:$0xff]  ;;  %v439_v51 = vld [vmem:[%s1654_s7 + $0x10] sm:$0xff]  ;;  %s1335_s2 = smov 80  }
   0x7   :  { %v1042_v27 = vld [vmem:[%s1651_s4] ss:$0 sm:$0xff]  ;;  %v440_v52 = vld [vmem:[%s1654_s7 + $0x18] sm:$0xff]  ;;  %v645_v20 = vld [vmem:[%s1656_s9 + $0x10] sm:$0xff]  ;;  %s1337_s3 = smov [#allocation2]  }
   0x8   :  { %1232 = vmatpush3.bf16.msra.mxu0 %v1231_v9  ;;  %v1049_v32 = vld [vmem:[%s1653_s6] ss:$0 sm:$0xff]  ;;  %v1258_v53 = vpack.c.bf16 %v440_v52, %v439_v51  ;;  %vm843_vm14 = vcmp.eq.s32.totalorder %v1503_v38, 1  ;;  %s1032_s23 = sshll.u32 %s1337_s3, 4  ;;  %s1033_s23 = int_to_ptr.vmem [resolvable:$true] %s1032_s23 }
   0x9   :  { %1239 = vmatprep.subr.bf16.mxu0 %v1328_v3  ;;  %1238 = vmatpush3.bf16.msra.mxu1 %v1237_v14  ;;  %v437_v48 = vld [vmem:[%s1654_s7] sm:$0xff]  ;;  %p1309_p1 = scmp.lt.s32.totalorder %s1033_s23, %s1033_s23 }
   0xa   :  { %1247 = vmatprep.subr.bf16.mxu1 %v1328_v3  ;;  %v1254_v50 = vpack.c.bf16 %v438_v49, %v437_v48  ;;  %v1057_v0 = vld [vmem:[%s1655_s8] ss:$0 sm:$0xff] }
   0xb   :  { %1130 = vmatmul.mubr.msk.f32.vlgmr.msra.gmra.mrb[0].mxu0 %vm63_vm1, %v51_v11  ;;  %v643_v16 = vld [vmem:[%s1656_s9] sm:$0xff] }
   0xc   :  { %1151 = vmatprep.mubr.msk.f32.mxu0 %vm1329_vm0, %v1330_v6 }
  0x11   :  { %1242 = vmatpush3.bf16.xpose.msk.msra.mxu0 %vm1466_vm3, %v1240_v17 }
  0x12   :  { %1243 = vmatprep.subr.bf16.mxu0 %v1328_v3 }
  0x19   :  { %1246 = vmatpush3.bf16.xpose.msk.msra.mxu0 %vm1466_vm3, %v1244_v21 }
  0x1a   :  { %1261 = vmatprep.subr.bf16.mxu0 %v1328_v3 }
  0xde   :  { %v133_v23 = vpop.f32.mrb[0].mxu0 }
  0xdf   :  { %v134_v24 = vadd.f32 %v1040_v22, %v133_v23  ;;  %v1131_v25 = vpop.f32.mrb[1].mxu0 }
  0xe1   :  { %v137_v26 = vmax.f32 %v134_v24, 0.0 }
  0xe3   :  { %1141 = vmatmul.mubr.msk.f32.vlgmr.msra.gmra.mrb[0].mxu1 %vm63_vm1, %v137_v26 }
  0xe4   :  { %1249 = vmatpush3.bf16.msra.mxu1 %v1240_v17  ;;  %1162 = vmatprep.mubr.msk.f32.mxu1 %vm1329_vm0, %v1330_v6  ;;  %v644_v17 = vld [vmem:[%s1656_s9 + $0x8] sm:$0xff] }
  0xe5   :  { %1250 = vmatprep.subr.bf16.mxu1 %v1328_v3  ;;  %v1268_v19 = vpack.c.bf16 %v644_v17, %v643_v16 }
  0xe8   :  { %1252 = vmatpush3.bf16.msra.mxu1 %v1244_v21  ;;  %v646_v21 = vld [vmem:[%s1656_s9 + $0x18] sm:$0xff] }
  0xe9   :  { %1253 = vmatprep.subr.bf16.mxu1 %v1328_v3  ;;  %v1272_v22 = vpack.c.bf16 %v646_v21, %v645_v20 }
 0x1b6   :  { %v218_v28 = vpop.f32.mrb[0].mxu1 }
 0x1b7   :  { %v1493_v29 = vadd.f32 %v1042_v27, %v218_v28  ;;  %v1142_v30 = vpop.f32.mrb[1].mxu1 }
 0x1b9   :  { %1152 = vmatmul.mubr.msk.f32.vlgmr.msra.gmra.mrb[2].mxu0 %vm233_vm2, %v1493_v29 }
 0x1ba   :  { %1184 = vmatprep.mubr.msk.f32.mxu0 %vm1329_vm0, %v1330_v6  ;;  %1263 = vmatpush3.bf16.msra.mxu0 %v1254_v50 }
 0x1bb   :  { %1264 = vmatprep.subr.bf16.mxu0 %v1328_v3 }
 0x1be   :  { %1266 = vmatpush3.bf16.msra.mxu0 %v1258_v53 }
 0x1bf   :  { %1267 = vmatprep.subr.bf16.mxu0 %v1328_v3 }
 0x28c   :  { %v314_v31 = vpop.f32.mrb[2].mxu0 }
 0x28d   :  { %v318_v33 = vmul.f32 2.0, %v314_v31  ;;  %v1153_v34 = vpop.f32.mrb[3].mxu0 }
 0x28f   :  { %v325_v35 = vsub.f32 %v1049_v32, %v318_v33 }
 0x291   :  { %v326_v36 = vsel %vm63_vm1, %v325_v35, inf }
 0x292   :  { %327 = vmin.xlane.f32.xlu0 %v326_v36 }
 0x31f   :  { %v328_v39 = vpop.xlane.xlu0 %327 }
 0x320   :  { %vm331_vm4 = vcmp.eq.f32.partialorder %v325_v35, %v328_v39  ;;  %v1065_v35 = vld [vmem:[%s1657_s10] ss:$0 sm:$0xff]  ;;  %s1333_s10 = smov 96  }
 0x321   :  { %v332_v40 = vsel %vm331_vm4, %v1503_v38, 32  ;;  %vm634_vm4 = vcmask 917248  }
 0x322   :  { %v333_v41 = vsel %vm63_vm1, %v332_v40, 2147483647 }
 0x323   :  { %v335_v42 = vshra.s32 %v333_v41, 16  ;;  %v334_v44 = vand.u32 65535, %v333_v41 }
 0x325   :  { %v337_v43 = vcvt.s32.f32 %v335_v42  ;;  %v336_v46 = vcvt.s32.f32 %v334_v44 }
 0x327   :  { %338 = vmin.xlane.f32.xlu0 %v337_v43 }
 0x3b4   :  { %v339_v45 = vpop.xlane.xlu0 %338 }
 0x3b5   :  { %vm340_vm5 = vcmp.eq.f32.partialorder %v337_v43, %v339_v45  ;;  %v345_v54 = vcvt.f32.s32 %v339_v45 }
 0x3b6   :  { %v341_v47 = vsel %vm340_vm5, %v336_v46, inf  ;;  %vm847_vm5 = vcmask 23552  }
 0x3b7   :  { %342 = vmin.xlane.f32.xlu1 %v341_v47  ;;  %v346_v56 = vshll.u32 %v345_v54, 16 }
 0x444   :  { %v343_v55 = vpop.xlane.xlu1 %342 }
 0x445   :  { %v344_v57 = vcvt.f32.s32 %v343_v55 }
 0x447   :  { %v1521_v58 = vadd.s32 %v346_v56, %v344_v57 }
 0x449   :  { %vm348_vm6 = vcmp.eq.s32.totalorder %v1503_v38, %v1521_v58 }
 0x44a   :  { %v1050_v59 = vsel %vm348_vm6, 1.0, %v1330_v6 }
 0x44b   :  { %1163 = vmatmul.mubr.msk.f32.vlgmr.msra.gmra.mrb[2].mxu1 %vm63_vm1, %v1050_v59 }
 0x44c   :  { %1256 = vmatpush3.bf16.xpose.msk.msra.mxu1 %vm1466_vm3, %v1254_v50  ;;  %1173 = vmatprep.mubr.msk.f32.mxu1 %vm1329_vm0, %v1330_v6 }
 0x44d   :  { %1257 = vmatprep.subr.bf16.mxu1 %v1328_v3 }
 0x454   :  { %1260 = vmatpush3.bf16.xpose.msk.msra.mxu1 %vm1466_vm3, %v1258_v53 }
 0x455   :  { %1275 = vmatprep.subr.bf16.mxu1 %v1328_v3 }
 0x51e   :  { %v1535_v60 = vpop.f32.mrb[2].mxu1 }
 0x51f   :  { %v1539_v61 = vsub.f32 %v1493_v29, %v1535_v60  ;;  %v1164_v62 = vpop.f32.mrb[3].mxu1 }
 0x521   :  { %1174 = vmatmul.mubr.msk.f32.vlgmr.msra.gmra.mrb[4].mxu1 %vm233_vm2, %v1539_v61 }
 0x522   :  { %1206 = vmatprep.mubr.msk.f32.mxu1 %vm1329_vm0, %v1330_v6  ;;  %1277 = vmatpush3.bf16.msra.mxu1 %v1268_v19 }
 0x523   :  { %1278 = vmatprep.subr.bf16.mxu1 %v1328_v3 }
 0x526   :  { %1280 = vmatpush3.bf16.msra.mxu1 %v1272_v22 }
 0x527   :  { %1281 = vmatprep.subr.bf16.mxu1 %v1328_v3 }
 0x5f4   :  { %v522_v63 = vpop.f32.mrb[4].mxu1 }
 0x5f5   :  { %v526_v1 = vmul.f32 2.0, %v522_v63  ;;  %v1175_v2 = vpop.f32.mrb[5].mxu1  ;;  %v854_v63 = vld [vmem:[%s1658_s11 + $0x8] sm:$0xff] }
 0x5f7   :  { %v533_v4 = vsub.f32 %v1057_v0, %v526_v1 }
 0x5f9   :  { %v534_v5 = vsel %vm63_vm1, %v533_v4, inf }
 0x5fa   :  { %535 = vmin.xlane.f32.xlu1 %v534_v5 }
 0x687   :  { %v536_v7 = vpop.xlane.xlu1 %535 }
 0x688   :  { %vm537_vm7 = vcmp.eq.f32.partialorder %v533_v4, %v536_v7  ;;  %v941_v7 = vld [vmem:[%s1660_s13] sm:$0xff] }
 0x689   :  { %v538_v8 = vsel %vm537_vm7, %v1503_v38, 32  ;;  %vm641_vm7 = vcmask 654848  }
 0x68a   :  { %v539_v9 = vsel %vm63_vm1, %v538_v8, 2147483647  ;;  %v942_v8 = vld [vmem:[%s1660_s13 + $0x8] sm:$0xff] }
 0x68b   :  { %v541_v10 = vshra.s32 %v539_v9, 16  ;;  %v540_v12 = vand.u32 65535, %v539_v9  ;;  %v943_v9 = vld [vmem:[%s1660_s13 + $0x10] sm:$0xff] }
 0x68d   :  { %v543_v11 = vcvt.s32.f32 %v541_v10  ;;  %v542_v14 = vcvt.s32.f32 %v540_v12  ;;  %v1285_v10 = vpack.c.bf16 %v942_v8, %v941_v7  ;;  %v1068_v12 = vld [vmem:[%s1659_s12] ss:$0 sm:$0xff]  ;;  %s1304_s12 = scalar_lea.vmem %s1033_s23, 256 }
 0x68e   :  { %p1305_p0 = scmp.ne.s32.totalorder %s1033_s23, %s1304_s12  ;;  %p1310_p2 = scmp.lt.s32.totalorder %s1304_s12, %s1304_s12 }
 0x68f   :  { %544 = vmin.xlane.f32.xlu0 %v543_v11 }
 0x690   :  { %p1311_p3 = por %p1310_p2, %p1309_p1 }
 0x692   :  { %p1312_p4 = pnand %p1311_p3, %p1305_p0 }
 0x71c   :  { %v545_v13 = vpop.xlane.xlu0 %544 }
 0x71d   :  { %vm546_vm8 = vcmp.eq.f32.partialorder %v543_v11, %v545_v13  ;;  %v551_v23 = vcvt.f32.s32 %v545_v13 }
 0x71e   :  { %v547_v15 = vsel %vm546_vm8, %v542_v14, inf }
 0x71f   :  { %548 = vmin.xlane.f32.xlu1 %v547_v15  ;;  %v552_v25 = vshll.u32 %v551_v23, 16 }
 0x7ac   :  { %v549_v24 = vpop.xlane.xlu1 %548 }
 0x7ad   :  { %v550_v26 = vcvt.f32.s32 %v549_v24 }
 0x7af   :  { %v1565_v27 = vadd.s32 %v552_v25, %v550_v26 }
 0x7b1   :  { %vm554_vm9 = vcmp.eq.s32.totalorder %v1503_v38, %v1565_v27 }
 0x7b2   :  { %v1058_v28 = vsel %vm554_vm9, 1.0, %v1330_v6 }
 0x7b3   :  { %1185 = vmatmul.mubr.msk.f32.vlgmr.msra.gmra.mrb[4].mxu0 %vm63_vm1, %v1058_v28 }
 0x7b4   :  { %1270 = vmatpush3.bf16.xpose.msk.msra.mxu0 %vm1466_vm3, %v1268_v19  ;;  %1195 = vmatprep.mubr.msk.f32.mxu0 %vm1329_vm0, %v1330_v6 }
 0x7b5   :  { %1271 = vmatprep.subr.bf16.mxu0 %v1328_v3 }
 0x7bc   :  { %1274 = vmatpush3.bf16.xpose.msk.msra.mxu0 %vm1466_vm3, %v1272_v22  ;;  %vm842_vm3 = vcmp.eq.s32.totalorder %v1503_v38, 0 }
 0x886   :  { %v626_v30 = vpop.f32.mrb[4].mxu0 }
 0x887   :  { %v636_v31 = vsub.f32 %v1539_v61, %v626_v30  ;;  %v1580_v32 = vadd.f32 %v626_v30, %v1535_v60  ;;  %v1186_v33 = vpop.f32.mrb[5].mxu0 }
 0x889   :  { %1196 = vmatmul.mubr.msk.f32.vlgmr.msra.gmra.mrb[6].mxu0 %vm233_vm2, %v636_v31 }
 0x95c   :  { %v728_v34 = vpop.f32.mrb[6].mxu0 }
 0x95d   :  { %v732_v36 = vmul.f32 2.0, %v728_v34  ;;  %v1197_v37 = vpop.f32.mrb[7].mxu0 }
 0x95f   :  { %v739_v39 = vsub.f32 %v1065_v35, %v732_v36 }
 0x961   :  { %v740_v18 = vsel %vm63_vm1, %v739_v39, inf }
 0x962   :  { %741 = vmin.xlane.f32.xlu0 %v740_v18 }
 0x9ef   :  { %v742_v40 = vpop.xlane.xlu0 %741 }
 0x9f0   :  { %vm743_vm10 = vcmp.eq.f32.partialorder %v739_v39, %v742_v40 }
 0x9f1   :  { %v744_v41 = vsel %vm743_vm10, %v1503_v38, 32 }
 0x9f2   :  { %v745_v42 = vsel %vm63_vm1, %v744_v41, 2147483647 }
 0x9f3   :  { %v747_v43 = vshra.s32 %v745_v42, 16  ;;  %v746_v45 = vand.u32 65535, %v745_v42 }
 0x9f5   :  { %v749_v44 = vcvt.s32.f32 %v747_v43  ;;  %v748_v47 = vcvt.s32.f32 %v746_v45 }
 0x9f7   :  { %750 = vmin.xlane.f32.xlu1 %v749_v44 }
 0xa08   :  { %223 = vrot.lane.b32.xlu1 %v1493_v29, %s1331_s27 }
 0xa0c   :  { %432 = vrot.lane.b32.xlu1 %v1539_v61, %s1332_s5 }
 0xa10   :  { %631 = vrot.lane.b32.xlu1 %v626_v30, %s1333_s10 }
 0xa14   :  { %638 = vrot.lane.b32.xlu1 %v636_v31, %s1334_s28 }
 0xa84   :  { %v751_v46 = vpop.xlane.xlu1 %750 }
 0xa85   :  { %vm752_vm11 = vcmp.eq.f32.partialorder %v749_v44, %v751_v46  ;;  %v757_v51 = vcvt.f32.s32 %v751_v46 }
 0xa86   :  { %v753_v48 = vsel %vm752_vm11, %v748_v47, inf }
 0xa87   :  { %754 = vmin.xlane.f32.xlu0 %v753_v48  ;;  %v758_v53 = vshll.u32 %v757_v51, 16 }
 0xa88   :  { %v224_v49 = vpop.permute.xlu1 %223 }
 0xa89   :  { %227 = vst.msk [vmem:[#allocation2] sm:$0xff] %vm226_vm12, %v224_v49 }
 0xa8c   :  { %v433_v50 = vpop.permute.xlu1 %432 }
 0xa90   :  { %v632_v54 = vpop.permute.xlu1 %631 }
 0xa94   :  { %v639_v62 = vpop.permute.xlu1 %638 }
 0xa9d   :  { %425 = vrot.lane.b32.xlu0 %v1535_v60, %s1335_s2 }
 0xb14   :  { %v755_v52 = vpop.xlane.xlu0 %754 }
 0xb15   :  { %v756_v55 = vcvt.f32.s32 %v755_v52 }
 0xb17   :  { %v759_v56 = vadd.s32 %v758_v53, %v756_v55 }
 0xb18   :  { %v426_v57 = vpop.permute.xlu0 %425 }
 0xb19   :  { %vm760_vm6 = vcmp.eq.s32.totalorder %v1503_v38, %v759_v56  ;;  %429 = vst.msk [vmem:[#allocation2] sm:$0xff] %vm428_vm13, %v426_v57  ;;  %v844_v59 = vsel %vm843_vm14, %v1565_v27, %v759_v56  ;;  %v853_v38 = vld [vmem:[%s1658_s11] sm:$0xff] }
 0xb1a   :  { %v1066_v60 = vsel %vm760_vm6, 1.0, %v1330_v6  ;;  %436 = vst.msk [vmem:[#allocation2] sm:$0xff] %vm435_vm15, %v433_v50  ;;  %v845_v61 = vsel %vm842_vm3, %v1521_v58, %v844_v59  ;;  %v1282_v0 = vpack.c.bf16 %v854_v63, %v853_v38 }
 0xb1b   :  { %1207 = vmatmul.mubr.msk.f32.vlgmr.msra.gmra.mrb[6].mxu1 %vm63_vm1, %v1066_v60  ;;  %635 = vst.msk [vmem:[#allocation2] sm:$0xff] %vm634_vm4, %v632_v54 }
 0xb1c   :  { %848 = vst.msk [vmem:[#allocation2 + $0x8] sm:$0xff] %vm847_vm5, %v845_v61  ;;  %1213 = vmatprep.mubr.msk.f32.mxu1 %vm1329_vm0, %v1330_v6  ;;  %1283 = vmatpush3.bf16.msra.mxu1 %v1282_v0 }
 0xb1d   :  { %642 = vst.msk [vmem:[#allocation2] sm:$0xff] %vm641_vm7, %v639_v62  ;;  %1284 = vmatprep.subr.bf16.mxu1 %v1328_v3 }
 0xbee   :  { %v832_v58 = vpop.f32.mrb[6].mxu1 }
 0xbef   :  { %v850_v1 = vadd.f32 %v1580_v32, %v832_v58  ;;  %837 = vrot.lane.b32.xlu0 %v832_v58, %s1336_s30  ;;  %v1208_v2 = vpop.f32.mrb[7].mxu1 }
 0xbf1   :  { %v851_v4 = vsub.f32 %v850_v1, %v1493_v29 }
 0xbf3   :  { %v852_v5 = vadd.f32 %v851_v4, %v1493_v29  ;;  %v944_v29 = vld [vmem:[%s1660_s13 + $0x18] sm:$0xff] }
 0xbf4   :  { %v1288_v11 = vpack.c.bf16 %v944_v29, %v943_v9 }
 0xbf5   :  { %1214 = vmatmul.mubr.msk.f32.vlgmr.msra.gmra.mrb[8].mxu1 %vm233_vm2, %v852_v5 }
 0xbf6   :  { %1224 = vmatprep.mubr.msk.f32.mxu1 %vm1329_vm0, %v1330_v6  ;;  %1286 = vmatpush3.bf16.msra.mxu1 %v1285_v10  ;;  %vm840_vm0 = vcmask 1048448  }
 0xbf7   :  { %1287 = vmatprep.subr.bf16.mxu1 %v1328_v3  ;;  %v1071_v3 = vld [vmem:[%s1661_s14] ss:$0 sm:$0xff] }
 0xbfa   :  { %1289 = vmatpush3.bf16.msra.mxu1 %v1288_v11 }
 0xc61   :  { %v838_v6 = vpop.permute.xlu0 %837 }
 0xc62   :  { %841 = vst.msk [vmem:[#allocation2] sm:$0xff] %vm840_vm0, %v838_v6 }
 0xcc8   :  { %v931_v13 = vpop.f32.mrb[8].mxu1 }
 0xcc9   :  { %v932_v14 = vadd.f32 %v1068_v12, %v931_v13  ;;  %v1215_v15 = vpop.f32.mrb[9].mxu1 }
 0xccb   :  { %v1070_v16 = vmul.f32 -1.442695, %v932_v14 }
 0xccd   :  { %1300 = vpow2.f32 %v1070_v16 }
 0xcd7   :  { %v1301_v17 = vpop.eup %1300 }
 0xcd8   :  { %v938_v19 = vadd.f32 1.0, %v1301_v17 }
 0xcda   :  { %1302 = vrcp.f32 %v938_v19 }
 0xce4   :  { %v1303_v20 = vpop.eup %1302 }
 0xce5   :  { %1225 = vmatmul.mubr.msk.f32.vlgmr.msra.gmra.mrb[10].mxu1 %vm63_vm1, %v1303_v20 }
 0xdb8   :  { %v1021_v21 = vpop.f32.mrb[10].mxu1 }
 0xdb9   :  { %v1022_v22 = vadd.f32 %v1071_v3, %v1021_v21  ;;  %v1226_v23 = vpop.f32.mrb[11].mxu1 }
 0xdbb   :  { %1025 = vst.msk [vmem:[#allocation2] sm:$0xff] %vm63_vm1, %v1022_v22 }
 0xdbc   :  { %1315 = shalt.err (!%p1312_p4)
}
 0xdbd   :  { %s1316_s9 = scalar_lea.hbm %s1662_s15, 256 }
 0xdbe   :  { %p1317_p5 = scmp.ne.s32.totalorder %s1662_s15, %s1316_s9  ;;  %p1320_p6 = scmp.lt.u32.totalorder %s1316_s9, %s1662_s15 }
 0xdc0   :  { %p1322_p7 = pnand %p1320_p6, %p1317_p5 }
 0xdc2   :  { %1325 = shalt.err (!%p1322_p7)
}
 0xdc3   :  { %1035 = dma.vmem_to_hbm [thread:$0]  %s1033_s23, 256, %s1662_s15, [#allocation3]  }
 0xdc4   :  { %1326 = dma.done.wait [#allocation3], 256  }
 0xdc5   :  { %1327 = vsyncadd [#allocation3], 4294967040 }
 0xdc6   :  { %1039 = vsyncpa [#allocation3], 1 }

</bundles_post_ra>
